<compile_context>
chip_gen: v7x
topology: tpu7x:2x2x1
jax: 0.10.0
libtpu: 0.0.40
codegen_flags: <defaults>
</compile_context>

<pallas_src>
import functools

import numpy as np
import jax
import jax.numpy as jnp
from jax import lax
from jax.experimental import pallas as pl
from jax.experimental.pallas import tpu as pltpu

EPS = 1e-5

# ConvTranspose2d(k=4, s=2, p=1): output row y = 2*i + a receives taps kh, each tap's
# input-row window (in 1-pixel zero-padded coordinates) starting at the offset below.
#   parity a -> ((kh, padded-offset), (kh, padded-offset))     [same table for columns]
_TAPS = (((1, 1), (3, 0)),   # parity 0
         ((0, 2), (2, 1)))   # parity 1


def _unet_up_kernel(x_ref, skip_ref, w_ref, o_ref, stats_ref):
    """One (image, phase, row-tile) grid step.

    x_ref    : (H, W, Cin)                 bfloat16, full image (resident per image)
    skip_ref : (TH, 2, W, 2*Cskip)         float32, parity-packed skip row tile
    w_ref    : (4, 4*Cin, Cout)  bf16      fused-K path (Cin < 128), or
               (4, 4, Cin, Cout) bf16      per-tap accumulating path
    o_ref    : (TH, 2, W, 2*(Cout+Cskip))  float32, parity-packed output row tile
    stats_ref: (2, Cout) f32 VMEM scratch  [channel sum ; channel sum-of-squares]
    """
    ph = pl.program_id(1)                  # 0: stats pass, 1: normalize/store pass
    h = pl.program_id(2)                   # row-tile index
    n_h = pl.num_programs(2)

    H, W, Cin = x_ref.shape
    TH = o_ref.shape[0]
    Cout = w_ref.shape[-1]
    Ctot = o_ref.shape[-1] // 2
    Cskip = Ctot - Cout
    fuse_k = len(w_ref.shape) == 3         # static: small-Cin im2col-K path

    # ---- padded row tile: zero-padded input rows [h0-1, h0+TH] ---------------------
    h0 = h * TH
    body = x_ref[pl.ds(h0, TH), :, :]                               # (TH, W, Cin)
    top = x_ref[pl.ds(jnp.maximum(h0 - 1, 0), 1), :, :]             # (1, W, Cin)
    top = top * jnp.where(h == 0, 0.0, 1.0).astype(top.dtype)       # zero at image top
    bot = x_ref[pl.ds(jnp.minimum(h0 + TH, H - 1), 1), :, :]
    bot = bot * jnp.where(h == n_h - 1, 0.0, 1.0).astype(bot.dtype)  # zero at bottom
    xrows = jnp.concatenate([top, body, bot], axis=0)               # (TH+2, W, Cin)

    # ---- 3 column-shifted copies (col offsets -1, 0, +1); rows sliced from these ---
    zc = jnp.zeros((TH + 2, 1, Cin), xrows.dtype)
    cols = (
        jnp.concatenate([zc, xrows[:, : W - 1, :]], axis=1),        # padded col off 0
        xrows,                                                      # padded col off 1
        jnp.concatenate([xrows[:, 1:, :], zc], axis=1),             # padded col off 2
    )
    cols2d = tuple(c.reshape((TH + 2) * W, Cin) for c in cols)

    def window(roff, coff):                                         # (TH*W, Cin) bf16
        return cols2d[coff][roff * W:(roff + TH) * W, :]

    # ---- conv-transpose: 4 output parities p = 2a + b (computed in BOTH phases) ----
    acc = []
    for a in (0, 1):
        for b in (0, 1):
            p = 2 * a + b
            wins = [window(roff, coff)
                    for _, roff in _TAPS[a] for _, coff in _TAPS[b]]
            if fuse_k:
                patch = jnp.concatenate(wins, axis=-1)              # (TH*W, 4*Cin)
                acc_p = jnp.dot(patch, w_ref[p],
                                preferred_element_type=jnp.float32)
            else:
                acc_p = jnp.dot(wins[0], w_ref[p, 0],
                                preferred_element_type=jnp.float32)
                for t in (1, 2, 3):
                    acc_p = acc_p + jnp.dot(wins[t], w_ref[p, t],
                                            preferred_element_type=jnp.float32)
            acc.append(acc_p)                                       # (TH*W, Cout) f32

    # ---- phase 0: accumulate per-channel sum / sum-of-squares ----------------------
    @pl.when(ph == 0)
    def _():
        @pl.when(h == 0)
        def _():
            stats_ref[...] = jnp.zeros_like(stats_ref)
        s = jnp.zeros((1, Cout), jnp.float32)
        q = jnp.zeros((1, Cout), jnp.float32)
        for acc_p in acc:
            s = s + jnp.sum(acc_p, axis=0, keepdims=True)
            q = q + jnp.sum(acc_p * acc_p, axis=0, keepdims=True)
        stats_ref[...] += jnp.concatenate([s, q], axis=0)

    # ---- phase 1: normalize + ReLU + interleave skip, direct sub-slice stores ------
    @pl.when(ph == 1)
    def _():
        inv_cnt = 1.0 / (4.0 * H * W)               # 2H * 2W output positions / image
        st = stats_ref[...]
        mean = st[0:1, :] * inv_cnt                                  # (1, Cout)
        var = jnp.maximum(st[1:2, :] * inv_cnt - mean * mean, 0.0)   # E[x^2] - mean^2
        scale = lax.rsqrt(var + EPS)
        skip = skip_ref[...]                                         # (TH, 2, W, 2*Cskip)
        for a in (0, 1):
            for b in (0, 1):
                p = 2 * a + b
                y = jnp.maximum((acc[p] - mean) * scale, 0.0)
                y = y.reshape(TH, W, Cout).astype(o_ref.dtype)
                o_ref[:, a, :, b * Ctot:b * Ctot + Cout] = y
                o_ref[:, a, :, b * Ctot + Cout:(b + 1) * Ctot] = (
                    skip[:, a, :, b * Cskip:(b + 1) * Cskip].astype(o_ref.dtype))


def _pack_weights(weight, fuse_k):
    """PyTorch ConvTranspose2d weight (Cin, Cout, 4, 4) -> per-parity bf16 matrices.

    fuse_k=True : (4, 4*Cin, Cout)   one stacked K=4*Cin matrix per output parity
    fuse_k=False: (4, 4, Cin, Cout)  one (Cin, Cout) matrix per (parity, tap)
    Tap / K-block order matches the kernel's window order exactly."""
    w = jnp.transpose(weight, (2, 3, 0, 1))                     # (kh, kw, Cin, Cout)
    per_parity = []
    for a in (0, 1):
        for b in (0, 1):
            blocks = [w[kh, kw] for kh, _ in _TAPS[a] for kw, _ in _TAPS[b]]
            if fuse_k:
                per_parity.append(jnp.concatenate(blocks, axis=0))   # (4*Cin, Cout)
            else:
                per_parity.append(jnp.stack(blocks, axis=0))         # (4, Cin, Cout)
    return jnp.stack(per_parity, axis=0).astype(jnp.bfloat16)


def _pick_tile_rows(H, W, Cin, Cout, Cskip, budget_bytes=20 * 1024 * 1024):
    """Largest divisor TH of H whose TH-dependent per-step VMEM footprint fits budget.

    (x stays fully resident per image; it is the small pre-upsample tensor.)
    Raise budget_bytes on v5e/v6e (128 MiB VMEM) for bigger tiles / better pipelining."""
    Ctot = Cout + Cskip

    def var_bytes(th):
        io = 32 * th * W * (Cskip + Ctot)              # skip + out tiles, f32, x2 buffers
        shifted = 3 * (th + 2) * W * Cin * 2           # 3 column-shifted bf16 copies
        patch = 8 * th * W * Cin if Cin < 128 else 0   # fused-K im2col patch (bf16)
        accs = 16 * th * W * Cout                      # 4 f32 parity accumulators
        norm = 4 * th * W * Cout                       # transient normalize buffer
        return io + shifted + patch + accs + norm

    th = H
    while th > 1 and (H % th != 0 or var_bytes(th) > budget_bytes):
        th -= 1
    return th


def unet_up(x, skip, weight, *, tile_rows=None):
    """UNetUp forward (NHWC).

    x:      (N, H, W, Cin)       float32 (cast to bf16 internally for the MXU)
    skip:   (N, 2H, 2W, Cskip)   float32
    weight: (Cin, Cout, 4, 4)    float32 (PyTorch ConvTranspose2d layout)
    returns (N, 2H, 2W, Cout + Cskip) float32
    """
    N, H, W, Cin = x.shape
    Cout = weight.shape[1]
    Cskip = skip.shape[-1]
    Ctot = Cout + Cskip

    TH = tile_rows if tile_rows is not None else _pick_tile_rows(H, W, Cin, Cout, Cskip)
    assert H % TH == 0, (H, TH)
    n_h = H // TH

    fuse_k = Cin < 128                      # im2col-K fusion only pays for small Cin
    w_packed = _pack_weights(weight, fuse_k)
    x_bf16 = x.astype(jnp.bfloat16)         # halve x DMA bytes; accumulation stays f32
    skip_r = skip.reshape(N, H, 2, W, 2 * Cskip)      # parity-packed view (free reshape)

    w_index = (lambda n, ph, h: (0, 0, 0)) if fuse_k else (lambda n, ph, h: (0, 0, 0, 0))
    # Skip/output tile index is pinned to 0 during phase 0 (stats pass): no extra skip
    # reads and no garbage output writebacks before phase 1 overwrites each block.
    tile_index = lambda n, ph, h: (n, ph * h, 0, 0, 0)

    out = pl.pallas_call(
        _unet_up_kernel,
        out_shape=jax.ShapeDtypeStruct((N, H, 2, W, 2 * Ctot), jnp.float32),
        grid_spec=pltpu.PrefetchScalarGridSpec(
            num_scalar_prefetch=0,
            grid=(N, 2, n_h),
            in_specs=[
                # x: full image, resident across phases / row tiles of that image.
                pl.BlockSpec((None, H, W, Cin), lambda n, ph, h: (n, 0, 0, 0)),
                pl.BlockSpec((None, TH, 2, W, 2 * Cskip), tile_index),
                # Constant index map -> weights stay resident, single DMA.
                pl.BlockSpec(w_packed.shape, w_index),
            ],
            out_specs=pl.BlockSpec((None, TH, 2, W, 2 * Ctot), tile_index),
            scratch_shapes=[pltpu.VMEM((2, Cout), jnp.float32)],   # [sum ; sumsq]
        ),
        compiler_params=pltpu.CompilerParams(
            # Batch axis megacore-shardable; phase/row axes carry the stats-scratch
            # dependency so they must stay "arbitrary".
            dimension_semantics=("parallel", "arbitrary", "arbitrary"),
            vmem_limit_bytes=48 * 1024 * 1024,     # safe on v7x (64 MiB physical)
        ),
    )(x_bf16, skip_r, w_packed)

    # Parity-packed (N, H, 2, W, 2*Ctot) -> (N, 2H, 2W, Ctot): free contiguous reshape.
    return out.reshape(N, 2 * H, 2 * W, Ctot)


def _reference(x, skip, weight):
    """Pure-numpy reference of the PyTorch forward (NHWC), float64."""
    x = np.asarray(x, np.float64)
    skip = np.asarray(skip, np.float64)
    weight = np.asarray(weight, np.float64)
    N, H, W, _ = x.shape
    Cout = weight.shape[1]
    Ho, Wo = 2 * H, 2 * W
    out = np.zeros((N, Ho, Wo, Cout))
    for n in range(N):
        for i in range(H):
            for j in range(W):
                for kh in range(4):
                    for kw in range(4):
                        y = 2 * i - 1 + kh
                        xx = 2 * j - 1 + kw
                        if 0 <= y < Ho and 0 <= xx < Wo:
                            out[n, y, xx, :] += x[n, i, j, :] @ weight[:, :, kh, kw]
    mean = out.mean(axis=(1, 2), keepdims=True)
    var = ((out - mean) ** 2).mean(axis=(1, 2), keepdims=True)
    out = np.maximum((out - mean) / np.sqrt(var + EPS), 0.0)
    return np.concatenate([out, skip], axis=-1)


if __name__ == "__main__":
    key = jax.random.PRNGKey(0)

    # (N, H, W, Cin, Cout, Cskip, tile_rows)
    configs = [
        (2, 8, 8, 8, 4, 4, None),      # tiny channels, fused-K path, single row tile
        (2, 8, 8, 8, 4, 4, 2),         # 4 row tiles: exercises halos + two-pass stats
        (1, 8, 8, 128, 128, 128, 4),   # lane-aligned channels, per-tap path, 2 row tiles
    ]

    for N, H, W, CIN, COUT, CSK, TR in configs:
        k1, k2, k3, key = jax.random.split(key, 4)
        x = jax.random.normal(k1, (N, H, W, CIN), jnp.float32)
        skip = jax.random.normal(k2, (N, 2 * H, 2 * W, CSK), jnp.float32)
        weight = jax.random.normal(k3, (CIN, COUT, 4, 4), jnp.float32) * 0.1

        fn = jax.jit(functools.partial(unet_up, tile_rows=TR))
        out = jax.block_until_ready(fn(x, skip, weight))

        ref = _reference(x, skip, weight)
        assert out.shape == (N, 2 * H, 2 * W, COUT + CSK), out.shape
        # bf16 matmul operands -> loose tolerance vs the float64 reference.
        np.testing.assert_allclose(np.asarray(out), ref, rtol=5e-2, atol=5e-2)

    print("KERNEL_OK")
</pallas_src>

<mosaic_0001>
module attributes {stable_mosaic.version = 11 : i64} {
  func.func @_unet_up_kernel(%arg0: i32, %arg1: i32, %arg2: i32, %arg3: memref<1x8x8x8xbf16, #tpu.memory_space<vmem>>, %arg4: memref<1x8x2x8x8xf32, #tpu.memory_space<vmem>>, %arg5: memref<4x32x4xbf16, #tpu.memory_space<vmem>>, %arg6: memref<1x8x2x8x16xf32, #tpu.memory_space<vmem>>, %arg7: memref<2x4xf32, #tpu.memory_space<vmem>>) attributes {dimension_semantics = [#tpu.dimension_semantics<parallel>, #tpu.dimension_semantics<arbitrary>, #tpu.dimension_semantics<arbitrary>], iteration_bounds = array<i64: 2, 2, 1>, scalar_prefetch = 0 : i64, scratch_operands = 1 : i64, tpu.core_type = #tpu.core_type<tc>, window_params = [{transform_indices = @transform_0, window_bounds = array<i64: 1, 8, 8, 8>}, {transform_indices = @transform_1, window_bounds = array<i64: 1, 8, 2, 8, 8>}, {pipeline_mode = #tpu.pipeline_mode<synchronous>, transform_indices = @transform_2, window_bounds = array<i64: 4, 32, 4>}, {transform_indices = @transform_3, window_bounds = array<i64: 1, 8, 2, 8, 16>}]} {
    %c8_i32 = arith.constant 8 : i32
    %0 = arith.muli %arg2, %c8_i32 : i32
    %c0 = arith.constant 0 : index
    %1 = arith.index_cast %0 : i32 to index
    %c0_0 = arith.constant 0 : index
    %c0_1 = arith.constant 0 : index
    %2 = vector.load %arg3[%c0, %1, %c0_0, %c0_1] : memref<1x8x8x8xbf16, #tpu.memory_space<vmem>>, vector<1x8x8x8xbf16>
    %3 = vector.shape_cast %2 : vector<1x8x8x8xbf16> to vector<8x8x8xbf16>
    %c1_i32 = arith.constant 1 : i32
    %4 = arith.subi %0, %c1_i32 : i32
    %c0_i32 = arith.constant 0 : i32
    %5 = arith.maxsi %4, %c0_i32 : i32
    %c0_2 = arith.constant 0 : index
    %6 = arith.index_cast %5 : i32 to index
    %c0_3 = arith.constant 0 : index
    %c0_4 = arith.constant 0 : index
    %7 = vector.load %arg3[%c0_2, %6, %c0_3, %c0_4] : memref<1x8x8x8xbf16, #tpu.memory_space<vmem>>, vector<1x1x8x8xbf16>
    %8 = vector.shape_cast %7 : vector<1x1x8x8xbf16> to vector<1x8x8xbf16>
    %c0_i32_5 = arith.constant 0 : i32
    %9 = arith.cmpi eq, %arg2, %c0_i32_5 : i32
    %cst = arith.constant 0.000000e+00 : f32
    %cst_6 = arith.constant 1.000000e+00 : f32
    %10 = arith.select %9, %cst, %cst_6 : f32
    %11 = arith.truncf %10 : f32 to bf16
    %12 = vector.broadcast %11 : bf16 to vector<1x8x8xbf16>
    %13 = arith.mulf %8, %12 : vector<1x8x8xbf16>
    %c8_i32_7 = arith.constant 8 : i32
    %14 = arith.addi %0, %c8_i32_7 : i32
    %c7_i32 = arith.constant 7 : i32
    %15 = arith.minsi %14, %c7_i32 : i32
    %c0_8 = arith.constant 0 : index
    %16 = arith.index_cast %15 : i32 to index
    %c0_9 = arith.constant 0 : index
    %c0_10 = arith.constant 0 : index
    %17 = vector.load %arg3[%c0_8, %16, %c0_9, %c0_10] : memref<1x8x8x8xbf16, #tpu.memory_space<vmem>>, vector<1x1x8x8xbf16>
    %18 = vector.shape_cast %17 : vector<1x1x8x8xbf16> to vector<1x8x8xbf16>
    %c0_i32_11 = arith.constant 0 : i32
    %19 = arith.cmpi eq, %arg2, %c0_i32_11 : i32
    %cst_12 = arith.constant 0.000000e+00 : f32
    %cst_13 = arith.constant 1.000000e+00 : f32
    %20 = arith.select %19, %cst_12, %cst_13 : f32
    %21 = arith.truncf %20 : f32 to bf16
    %22 = vector.broadcast %21 : bf16 to vector<1x8x8xbf16>
    %23 = arith.mulf %18, %22 : vector<1x8x8xbf16>
    %24 = tpu.concatenate %13, %3, %23 in 0 : vector<1x8x8xbf16>, vector<8x8x8xbf16>, vector<1x8x8xbf16> -> vector<10x8x8xbf16>
    %cst_14 = arith.constant 0.000000e+00 : bf16
    %25 = vector.broadcast %cst_14 : bf16 to vector<10x1x8xbf16>
    %26 = vector.extract_strided_slice %24 {offsets = [0, 0, 0], sizes = [10, 7, 8], strides = [1, 1, 1]} : vector<10x8x8xbf16> to vector<10x7x8xbf16>
    %27 = tpu.concatenate %25, %26 in 1 : vector<10x1x8xbf16>, vector<10x7x8xbf16> -> vector<10x8x8xbf16>
    %28 = vector.extract_strided_slice %24 {offsets = [0, 1, 0], sizes = [10, 7, 8], strides = [1, 1, 1]} : vector<10x8x8xbf16> to vector<10x7x8xbf16>
    %29 = tpu.concatenate %28, %25 in 1 : vector<10x7x8xbf16>, vector<10x1x8xbf16> -> vector<10x8x8xbf16>
    %30 = vector.shape_cast %27 : vector<10x8x8xbf16> to vector<80x8xbf16>
    %31 = vector.shape_cast %24 : vector<10x8x8xbf16> to vector<80x8xbf16>
    %32 = vector.shape_cast %29 : vector<10x8x8xbf16> to vector<80x8xbf16>
    %33 = vector.extract_strided_slice %31 {offsets = [8, 0], sizes = [64, 8], strides = [1, 1]} : vector<80x8xbf16> to vector<64x8xbf16>
    %34 = vector.extract_strided_slice %30 {offsets = [8, 0], sizes = [64, 8], strides = [1, 1]} : vector<80x8xbf16> to vector<64x8xbf16>
    %35 = vector.extract_strided_slice %31 {offsets = [0, 0], sizes = [64, 8], strides = [1, 1]} : vector<80x8xbf16> to vector<64x8xbf16>
    %36 = vector.extract_strided_slice %30 {offsets = [0, 0], sizes = [64, 8], strides = [1, 1]} : vector<80x8xbf16> to vector<64x8xbf16>
    %37 = tpu.concatenate %33, %34, %35, %36 in 1 : vector<64x8xbf16>, vector<64x8xbf16>, vector<64x8xbf16>, vector<64x8xbf16> -> vector<64x32xbf16>
    %c0_15 = arith.constant 0 : index
    %c0_16 = arith.constant 0 : index
    %c0_17 = arith.constant 0 : index
    %38 = vector.load %arg5[%c0_15, %c0_16, %c0_17] : memref<4x32x4xbf16, #tpu.memory_space<vmem>>, vector<1x32x4xbf16>
    %39 = vector.shape_cast %38 : vector<1x32x4xbf16> to vector<32x4xbf16>
    %cst_18 = arith.constant dense<0.000000e+00> : vector<64x4xf32>
    %40 = tpu.matmul %37, %39, %cst_18 {dimension_numbers = #tpu.dot_dimension_numbers<[1], [0], [0], [1], [0, 0, 1, 1], [], []>} : vector<64x32xbf16>, vector<32x4xbf16>, vector<64x4xf32> -> vector<64x4xf32>
    %41 = vector.extract_strided_slice %32 {offsets = [8, 0], sizes = [64, 8], strides = [1, 1]} : vector<80x8xbf16> to vector<64x8xbf16>
    %42 = vector.extract_strided_slice %31 {offsets = [8, 0], sizes = [64, 8], strides = [1, 1]} : vector<80x8xbf16> to vector<64x8xbf16>
    %43 = vector.extract_strided_slice %32 {offsets = [0, 0], sizes = [64, 8], strides = [1, 1]} : vector<80x8xbf16> to vector<64x8xbf16>
    %44 = vector.extract_strided_slice %31 {offsets = [0, 0], sizes = [64, 8], strides = [1, 1]} : vector<80x8xbf16> to vector<64x8xbf16>
    %45 = tpu.concatenate %41, %42, %43, %44 in 1 : vector<64x8xbf16>, vector<64x8xbf16>, vector<64x8xbf16>, vector<64x8xbf16> -> vector<64x32xbf16>
    %c1 = arith.constant 1 : index
    %c0_19 = arith.constant 0 : index
    %c0_20 = arith.constant 0 : index
    %46 = vector.load %arg5[%c1, %c0_19, %c0_20] : memref<4x32x4xbf16, #tpu.memory_space<vmem>>, vector<1x32x4xbf16>
    %47 = vector.shape_cast %46 : vector<1x32x4xbf16> to vector<32x4xbf16>
    %cst_21 = arith.constant dense<0.000000e+00> : vector<64x4xf32>
    %48 = tpu.matmul %45, %47, %cst_21 {dimension_numbers = #tpu.dot_dimension_numbers<[1], [0], [0], [1], [0, 0, 1, 1], [], []>} : vector<64x32xbf16>, vector<32x4xbf16>, vector<64x4xf32> -> vector<64x4xf32>
    %49 = vector.extract_strided_slice %31 {offsets = [16, 0], sizes = [64, 8], strides = [1, 1]} : vector<80x8xbf16> to vector<64x8xbf16>
    %50 = vector.extract_strided_slice %30 {offsets = [16, 0], sizes = [64, 8], strides = [1, 1]} : vector<80x8xbf16> to vector<64x8xbf16>
    %51 = vector.extract_strided_slice %31 {offsets = [8, 0], sizes = [64, 8], strides = [1, 1]} : vector<80x8xbf16> to vector<64x8xbf16>
    %52 = vector.extract_strided_slice %30 {offsets = [8, 0], sizes = [64, 8], strides = [1, 1]} : vector<80x8xbf16> to vector<64x8xbf16>
    %53 = tpu.concatenate %49, %50, %51, %52 in 1 : vector<64x8xbf16>, vector<64x8xbf16>, vector<64x8xbf16>, vector<64x8xbf16> -> vector<64x32xbf16>
    %c2 = arith.constant 2 : index
    %c0_22 = arith.constant 0 : index
    %c0_23 = arith.constant 0 : index
    %54 = vector.load %arg5[%c2, %c0_22, %c0_23] : memref<4x32x4xbf16, #tpu.memory_space<vmem>>, vector<1x32x4xbf16>
    %55 = vector.shape_cast %54 : vector<1x32x4xbf16> to vector<32x4xbf16>
    %cst_24 = arith.constant dense<0.000000e+00> : vector<64x4xf32>
    %56 = tpu.matmul %53, %55, %cst_24 {dimension_numbers = #tpu.dot_dimension_numbers<[1], [0], [0], [1], [0, 0, 1, 1], [], []>} : vector<64x32xbf16>, vector<32x4xbf16>, vector<64x4xf32> -> vector<64x4xf32>
    %57 = vector.extract_strided_slice %32 {offsets = [16, 0], sizes = [64, 8], strides = [1, 1]} : vector<80x8xbf16> to vector<64x8xbf16>
    %58 = vector.extract_strided_slice %31 {offsets = [16, 0], sizes = [64, 8], strides = [1, 1]} : vector<80x8xbf16> to vector<64x8xbf16>
    %59 = vector.extract_strided_slice %32 {offsets = [8, 0], sizes = [64, 8], strides = [1, 1]} : vector<80x8xbf16> to vector<64x8xbf16>
    %60 = vector.extract_strided_slice %31 {offsets = [8, 0], sizes = [64, 8], strides = [1, 1]} : vector<80x8xbf16> to vector<64x8xbf16>
    %61 = tpu.concatenate %57, %58, %59, %60 in 1 : vector<64x8xbf16>, vector<64x8xbf16>, vector<64x8xbf16>, vector<64x8xbf16> -> vector<64x32xbf16>
    %c3 = arith.constant 3 : index
    %c0_25 = arith.constant 0 : index
    %c0_26 = arith.constant 0 : index
    %62 = vector.load %arg5[%c3, %c0_25, %c0_26] : memref<4x32x4xbf16, #tpu.memory_space<vmem>>, vector<1x32x4xbf16>
    %63 = vector.shape_cast %62 : vector<1x32x4xbf16> to vector<32x4xbf16>
    %cst_27 = arith.constant dense<0.000000e+00> : vector<64x4xf32>
    %64 = tpu.matmul %61, %63, %cst_27 {dimension_numbers = #tpu.dot_dimension_numbers<[1], [0], [0], [1], [0, 0, 1, 1], [], []>} : vector<64x32xbf16>, vector<32x4xbf16>, vector<64x4xf32> -> vector<64x4xf32>
    %c0_i32_28 = arith.constant 0 : i32
    %65 = arith.cmpi eq, %arg1, %c0_i32_28 : i32
    %66 = arith.extui %65 : i1 to i32
    %c0_i32_29 = arith.constant 0 : i32
    %67 = arith.cmpi ne, %66, %c0_i32_29 : i32
    scf.if %67 {
      %c0_i32_32 = arith.constant 0 : i32
      %71 = arith.cmpi eq, %arg2, %c0_i32_32 : i32
      %72 = arith.extui %71 : i1 to i32
      %c0_i32_33 = arith.constant 0 : i32
      %73 = arith.cmpi ne, %72, %c0_i32_33 : i32
      scf.if %73 {
        %cst_48 = arith.constant 0.000000e+00 : f32
        %108 = vector.broadcast %cst_48 : f32 to vector<2x4xf32>
        %c0_49 = arith.constant 0 : index
        %c0_50 = arith.constant 0 : index
        %109 = vector.load %arg7[%c0_49, %c0_50] : memref<2x4xf32, #tpu.memory_space<vmem>>, vector<2x4xf32>
        tpu.vector_store %arg7[%c0_49, %c0_50], %108 {strides = array<i32>} : memref<2x4xf32, #tpu.memory_space<vmem>>, vector<2x4xf32>,
      } else {
      }
      %cst_34 = arith.constant 0.000000e+00 : f32
      %74 = vector.broadcast %cst_34 : f32 to vector<1x4xf32>
      %cst_35 = arith.constant 0.000000e+00 : f32
      %75 = vector.broadcast %cst_35 : f32 to vector<1x4xf32>
      %cst_36 = arith.constant dense<0.000000e+00> : vector<4xf32>
      %76 = vector.multi_reduction <add>, %40, %cst_36 [0] : vector<64x4xf32> to vector<4xf32>
      %77 = vector.shape_cast %76 : vector<4xf32> to vector<1x4xf32>
      %78 = arith.addf %74, %77 : vector<1x4xf32>
      %79 = arith.mulf %40, %40 : vector<64x4xf32>
      %cst_37 = arith.constant dense<0.000000e+00> : vector<4xf32>
      %80 = vector.multi_reduction <add>, %79, %cst_37 [0] : vector<64x4xf32> to vector<4xf32>
      %81 = vector.shape_cast %80 : vector<4xf32> to vector<1x4xf32>
      %82 = arith.addf %75, %81 : vector<1x4xf32>
      %cst_38 = arith.constant dense<0.000000e+00> : vector<4xf32>
      %83 = vector.multi_reduction <add>, %48, %cst_38 [0] : vector<64x4xf32> to vector<4xf32>
      %84 = vector.shape_cast %83 : vector<4xf32> to vector<1x4xf32>
      %85 = arith.addf %78, %84 : vector<1x4xf32>
      %86 = arith.mulf %48, %48 : vector<64x4xf32>
      %cst_39 = arith.constant dense<0.000000e+00> : vector<4xf32>
      %87 = vector.multi_reduction <add>, %86, %cst_39 [0] : vector<64x4xf32> to vector<4xf32>
      %88 = vector.shape_cast %87 : vector<4xf32> to vector<1x4xf32>
      %89 = arith.addf %82, %88 : vector<1x4xf32>
      %cst_40 = arith.constant dense<0.000000e+00> : vector<4xf32>
      %90 = vector.multi_reduction <add>, %56, %cst_40 [0] : vector<64x4xf32> to vector<4xf32>
      %91 = vector.shape_cast %90 : vector<4xf32> to vector<1x4xf32>
      %92 = arith.addf %85, %91 : vector<1x4xf32>
      %93 = arith.mulf %56, %56 : vector<64x4xf32>
      %cst_41 = arith.constant dense<0.000000e+00> : vector<4xf32>
      %94 = vector.multi_reduction <add>, %93, %cst_41 [0] : vector<64x4xf32> to vector<4xf32>
      %95 = vector.shape_cast %94 : vector<4xf32> to vector<1x4xf32>
      %96 = arith.addf %89, %95 : vector<1x4xf32>
      %cst_42 = arith.constant dense<0.000000e+00> : vector<4xf32>
      %97 = vector.multi_reduction <add>, %64, %cst_42 [0] : vector<64x4xf32> to vector<4xf32>
      %98 = vector.shape_cast %97 : vector<4xf32> to vector<1x4xf32>
      %99 = arith.addf %92, %98 : vector<1x4xf32>
      %100 = arith.mulf %64, %64 : vector<64x4xf32>
      %cst_43 = arith.constant dense<0.000000e+00> : vector<4xf32>
      %101 = vector.multi_reduction <add>, %100, %cst_43 [0] : vector<64x4xf32> to vector<4xf32>
      %102 = vector.shape_cast %101 : vector<4xf32> to vector<1x4xf32>
      %103 = arith.addf %96, %102 : vector<1x4xf32>
      %c0_44 = arith.constant 0 : index
      %c0_45 = arith.constant 0 : index
      %104 = vector.load %arg7[%c0_44, %c0_45] : memref<2x4xf32, #tpu.memory_space<vmem>>, vector<2x4xf32>
      %105 = tpu.concatenate %99, %103 in 0 : vector<1x4xf32>, vector<1x4xf32> -> vector<2x4xf32>
      %106 = arith.addf %104, %105 : vector<2x4xf32>
      %c0_46 = arith.constant 0 : index
      %c0_47 = arith.constant 0 : index
      %107 = vector.load %arg7[%c0_46, %c0_47] : memref<2x4xf32, #tpu.memory_space<vmem>>, vector<2x4xf32>
      tpu.vector_store %arg7[%c0_46, %c0_47], %106 {strides = array<i32>} : memref<2x4xf32, #tpu.memory_space<vmem>>, vector<2x4xf32>,
    } else {
    }
    %c1_i32_30 = arith.constant 1 : i32
    %68 = arith.cmpi eq, %arg1, %c1_i32_30 : i32
    %69 = arith.extui %68 : i1 to i32
    %c0_i32_31 = arith.constant 0 : i32
    %70 = arith.cmpi ne, %69, %c0_i32_31 : i32
    scf.if %70 {
      %c0_32 = arith.constant 0 : index
      %c0_33 = arith.constant 0 : index
      %71 = vector.load %arg7[%c0_32, %c0_33] : memref<2x4xf32, #tpu.memory_space<vmem>>, vector<2x4xf32>
      %72 = vector.extract_strided_slice %71 {offsets = [0, 0], sizes = [1, 4], strides = [1, 1]} : vector<2x4xf32> to vector<1x4xf32>
      %cst_34 = arith.constant 3.906250e-03 : f32
      %73 = vector.broadcast %cst_34 : f32 to vector<1x4xf32>
      %74 = arith.mulf %72, %73 : vector<1x4xf32>
      %75 = vector.extract_strided_slice %71 {offsets = [1, 0], sizes = [1, 4], strides = [1, 1]} : vector<2x4xf32> to vector<1x4xf32>
      %cst_35 = arith.constant 3.906250e-03 : f32
      %76 = vector.broadcast %cst_35 : f32 to vector<1x4xf32>
      %77 = arith.mulf %75, %76 : vector<1x4xf32>
      %78 = arith.mulf %74, %74 : vector<1x4xf32>
      %79 = arith.subf %77, %78 : vector<1x4xf32>
      %cst_36 = arith.constant 0.000000e+00 : f32
      %80 = vector.broadcast %cst_36 : f32 to vector<1x4xf32>
      %81 = arith.maximumf %79, %80 : vector<1x4xf32>
      %cst_37 = arith.constant 9.99999974E-6 : f32
      %82 = vector.broadcast %cst_37 : f32 to vector<1x4xf32>
      %83 = arith.addf %81, %82 : vector<1x4xf32>
      %84 = math.rsqrt %83 : vector<1x4xf32>
      %c0_38 = arith.constant 0 : index
      %c0_39 = arith.constant 0 : index
      %c0_40 = arith.constant 0 : index
      %c0_41 = arith.constant 0 : index
      %c0_42 = arith.constant 0 : index
      %85 = vector.load %arg4[%c0_38, %c0_39, %c0_40, %c0_41, %c0_42] : memref<1x8x2x8x8xf32, #tpu.memory_space<vmem>>, vector<1x8x2x8x8xf32>
      %86 = vector.shape_cast %85 : vector<1x8x2x8x8xf32> to vector<8x2x8x8xf32>
      %87 = vector.broadcast %74 : vector<1x4xf32> to vector<64x4xf32>
      %88 = arith.subf %40, %87 : vector<64x4xf32>
      %89 = vector.broadcast %84 : vector<1x4xf32> to vector<64x4xf32>
      %90 = arith.mulf %88, %89 : vector<64x4xf32>
      %cst_43 = arith.constant 0.000000e+00 : f32
      %91 = vector.broadcast %cst_43 : f32 to vector<64x4xf32>
      %92 = arith.maximumf %90, %91 : vector<64x4xf32>
      %93 = vector.shape_cast %92 : vector<64x4xf32> to vector<8x8x4xf32>
      %c0_44 = arith.constant 0 : index
      %c0_45 = arith.constant 0 : index
      %c0_46 = arith.constant 0 : index
      %c0_47 = arith.constant 0 : index
      %c0_48 = arith.constant 0 : index
      %94 = vector.load %arg6[%c0_44, %c0_45, %c0_46, %c0_47, %c0_48] : memref<1x8x2x8x16xf32, #tpu.memory_space<vmem>>, vector<1x8x1x8x4xf32>
      %95 = vector.shape_cast %94 : vector<1x8x1x8x4xf32> to vector<8x8x4xf32>
      %96 = vector.shape_cast %93 : vector<8x8x4xf32> to vector<1x8x1x8x4xf32>
      tpu.vector_store %arg6[%c0_44, %c0_45, %c0_46, %c0_47, %c0_48], %96 {strides = array<i32>} : memref<1x8x2x8x16xf32, #tpu.memory_space<vmem>>, vector<1x8x1x8x4xf32>,
      %97 = vector.extract_strided_slice %86 {offsets = [0, 0, 0, 0], sizes = [8, 1, 8, 4], strides = [1, 1, 1, 1]} : vector<8x2x8x8xf32> to vector<8x1x8x4xf32>
      %98 = vector.shape_cast %97 : vector<8x1x8x4xf32> to vector<8x8x4xf32>
      %c0_49 = arith.constant 0 : index
      %c0_50 = arith.constant 0 : index
      %c0_51 = arith.constant 0 : index
      %c0_52 = arith.constant 0 : index
      %c4 = arith.constant 4 : index
      %99 = vector.load %arg6[%c0_49, %c0_50, %c0_51, %c0_52, %c4] : memref<1x8x2x8x16xf32, #tpu.memory_space<vmem>>, vector<1x8x1x8x4xf32>
      %100 = vector.shape_cast %99 : vector<1x8x1x8x4xf32> to vector<8x8x4xf32>
      %101 = vector.shape_cast %98 : vector<8x8x4xf32> to vector<1x8x1x8x4xf32>
      tpu.vector_store %arg6[%c0_49, %c0_50, %c0_51, %c0_52, %c4], %101 {strides = array<i32>} : memref<1x8x2x8x16xf32, #tpu.memory_space<vmem>>, vector<1x8x1x8x4xf32>,
      %102 = vector.broadcast %74 : vector<1x4xf32> to vector<64x4xf32>
      %103 = arith.subf %48, %102 : vector<64x4xf32>
      %104 = vector.broadcast %84 : vector<1x4xf32> to vector<64x4xf32>
      %105 = arith.mulf %103, %104 : vector<64x4xf32>
      %cst_53 = arith.constant 0.000000e+00 : f32
      %106 = vector.broadcast %cst_53 : f32 to vector<64x4xf32>
      %107 = arith.maximumf %105, %106 : vector<64x4xf32>
      %108 = vector.shape_cast %107 : vector<64x4xf32> to vector<8x8x4xf32>
      %c0_54 = arith.constant 0 : index
      %c0_55 = arith.constant 0 : index
      %c0_56 = arith.constant 0 : index
      %c0_57 = arith.constant 0 : index
      %c8 = arith.constant 8 : index
      %109 = vector.load %arg6[%c0_54, %c0_55, %c0_56, %c0_57, %c8] : memref<1x8x2x8x16xf32, #tpu.memory_space<vmem>>, vector<1x8x1x8x4xf32>
      %110 = vector.shape_cast %109 : vector<1x8x1x8x4xf32> to vector<8x8x4xf32>
      %111 = vector.shape_cast %108 : vector<8x8x4xf32> to vector<1x8x1x8x4xf32>
      tpu.vector_store %arg6[%c0_54, %c0_55, %c0_56, %c0_57, %c8], %111 {strides = array<i32>} : memref<1x8x2x8x16xf32, #tpu.memory_space<vmem>>, vector<1x8x1x8x4xf32>,
      %112 = vector.extract_strided_slice %86 {offsets = [0, 0, 0, 4], sizes = [8, 1, 8, 4], strides = [1, 1, 1, 1]} : vector<8x2x8x8xf32> to vector<8x1x8x4xf32>
      %113 = vector.shape_cast %112 : vector<8x1x8x4xf32> to vector<8x8x4xf32>
      %c0_58 = arith.constant 0 : index
      %c0_59 = arith.constant 0 : index
      %c0_60 = arith.constant 0 : index
      %c0_61 = arith.constant 0 : index
      %c12 = arith.constant 12 : index
      %114 = vector.load %arg6[%c0_58, %c0_59, %c0_60, %c0_61, %c12] : memref<1x8x2x8x16xf32, #tpu.memory_space<vmem>>, vector<1x8x1x8x4xf32>
      %115 = vector.shape_cast %114 : vector<1x8x1x8x4xf32> to vector<8x8x4xf32>
      %116 = vector.shape_cast %113 : vector<8x8x4xf32> to vector<1x8x1x8x4xf32>
      tpu.vector_store %arg6[%c0_58, %c0_59, %c0_60, %c0_61, %c12], %116 {strides = array<i32>} : memref<1x8x2x8x16xf32, #tpu.memory_space<vmem>>, vector<1x8x1x8x4xf32>,
      %117 = vector.broadcast %74 : vector<1x4xf32> to vector<64x4xf32>
      %118 = arith.subf %56, %117 : vector<64x4xf32>
      %119 = vector.broadcast %84 : vector<1x4xf32> to vector<64x4xf32>
      %120 = arith.mulf %118, %119 : vector<64x4xf32>
      %cst_62 = arith.constant 0.000000e+00 : f32
      %121 = vector.broadcast %cst_62 : f32 to vector<64x4xf32>
      %122 = arith.maximumf %120, %121 : vector<64x4xf32>
      %123 = vector.shape_cast %122 : vector<64x4xf32> to vector<8x8x4xf32>
      %c0_63 = arith.constant 0 : index
      %c0_64 = arith.constant 0 : index
      %c1_65 = arith.constant 1 : index
      %c0_66 = arith.constant 0 : index
      %c0_67 = arith.constant 0 : index
      %124 = vector.load %arg6[%c0_63, %c0_64, %c1_65, %c0_66, %c0_67] : memref<1x8x2x8x16xf32, #tpu.memory_space<vmem>>, vector<1x8x1x8x4xf32>
      %125 = vector.shape_cast %124 : vector<1x8x1x8x4xf32> to vector<8x8x4xf32>
      %126 = vector.shape_cast %123 : vector<8x8x4xf32> to vector<1x8x1x8x4xf32>
      tpu.vector_store %arg6[%c0_63, %c0_64, %c1_65, %c0_66, %c0_67], %126 {strides = array<i32>} : memref<1x8x2x8x16xf32, #tpu.memory_space<vmem>>, vector<1x8x1x8x4xf32>,
      %127 = vector.extract_strided_slice %86 {offsets = [0, 1, 0, 0], sizes = [8, 1, 8, 4], strides = [1, 1, 1, 1]} : vector<8x2x8x8xf32> to vector<8x1x8x4xf32>
      %128 = vector.shape_cast %127 : vector<8x1x8x4xf32> to vector<8x8x4xf32>
      %c0_68 = arith.constant 0 : index
      %c0_69 = arith.constant 0 : index
      %c1_70 = arith.constant 1 : index
      %c0_71 = arith.constant 0 : index
      %c4_72 = arith.constant 4 : index
      %129 = vector.load %arg6[%c0_68, %c0_69, %c1_70, %c0_71, %c4_72] : memref<1x8x2x8x16xf32, #tpu.memory_space<vmem>>, vector<1x8x1x8x4xf32>
      %130 = vector.shape_cast %129 : vector<1x8x1x8x4xf32> to vector<8x8x4xf32>
      %131 = vector.shape_cast %128 : vector<8x8x4xf32> to vector<1x8x1x8x4xf32>
      tpu.vector_store %arg6[%c0_68, %c0_69, %c1_70, %c0_71, %c4_72], %131 {strides = array<i32>} : memref<1x8x2x8x16xf32, #tpu.memory_space<vmem>>, vector<1x8x1x8x4xf32>,
      %132 = vector.broadcast %74 : vector<1x4xf32> to vector<64x4xf32>
      %133 = arith.subf %64, %132 : vector<64x4xf32>
      %134 = vector.broadcast %84 : vector<1x4xf32> to vector<64x4xf32>
      %135 = arith.mulf %133, %134 : vector<64x4xf32>
      %cst_73 = arith.constant 0.000000e+00 : f32
      %136 = vector.broadcast %cst_73 : f32 to vector<64x4xf32>
      %137 = arith.maximumf %135, %136 : vector<64x4xf32>
      %138 = vector.shape_cast %137 : vector<64x4xf32> to vector<8x8x4xf32>
      %c0_74 = arith.constant 0 : index
      %c0_75 = arith.constant 0 : index
      %c1_76 = arith.constant 1 : index
      %c0_77 = arith.constant 0 : index
      %c8_78 = arith.constant 8 : index
      %139 = vector.load %arg6[%c0_74, %c0_75, %c1_76, %c0_77, %c8_78] : memref<1x8x2x8x16xf32, #tpu.memory_space<vmem>>, vector<1x8x1x8x4xf32>
      %140 = vector.shape_cast %139 : vector<1x8x1x8x4xf32> to vector<8x8x4xf32>
      %141 = vector.shape_cast %138 : vector<8x8x4xf32> to vector<1x8x1x8x4xf32>
      tpu.vector_store %arg6[%c0_74, %c0_75, %c1_76, %c0_77, %c8_78], %141 {strides = array<i32>} : memref<1x8x2x8x16xf32, #tpu.memory_space<vmem>>, vector<1x8x1x8x4xf32>,
      %142 = vector.extract_strided_slice %86 {offsets = [0, 1, 0, 4], sizes = [8, 1, 8, 4], strides = [1, 1, 1, 1]} : vector<8x2x8x8xf32> to vector<8x1x8x4xf32>
      %143 = vector.shape_cast %142 : vector<8x1x8x4xf32> to vector<8x8x4xf32>
      %c0_79 = arith.constant 0 : index
      %c0_80 = arith.constant 0 : index
      %c1_81 = arith.constant 1 : index
      %c0_82 = arith.constant 0 : index
      %c12_83 = arith.constant 12 : index
      %144 = vector.load %arg6[%c0_79, %c0_80, %c1_81, %c0_82, %c12_83] : memref<1x8x2x8x16xf32, #tpu.memory_space<vmem>>, vector<1x8x1x8x4xf32>
      %145 = vector.shape_cast %144 : vector<1x8x1x8x4xf32> to vector<8x8x4xf32>
      %146 = vector.shape_cast %143 : vector<8x8x4xf32> to vector<1x8x1x8x4xf32>
      tpu.vector_store %arg6[%c0_79, %c0_80, %c1_81, %c0_82, %c12_83], %146 {strides = array<i32>} : memref<1x8x2x8x16xf32, #tpu.memory_space<vmem>>, vector<1x8x1x8x4xf32>,
    } else {
    }
    return
  }
  func.func @transform_0(%arg0: i32, %arg1: i32, %arg2: i32) -> (i32, i32, i32, i32) {
    %c0_i32 = arith.constant 0 : i32
    %c0_i32_0 = arith.constant 0 : i32
    %c0_i32_1 = arith.constant 0 : i32
    %c0_i32_2 = arith.constant 0 : i32
    return %arg0, %c0_i32, %c0_i32_0, %c0_i32_1 : i32, i32, i32, i32
  }
  func.func @transform_1(%arg0: i32, %arg1: i32, %arg2: i32) -> (i32, i32, i32, i32, i32) {
    %0 = arith.muli %arg1, %arg2 : i32
    %c0_i32 = arith.constant 0 : i32
    %c0_i32_0 = arith.constant 0 : i32
    %c0_i32_1 = arith.constant 0 : i32
    %c0_i32_2 = arith.constant 0 : i32
    return %arg0, %0, %c0_i32, %c0_i32_0, %c0_i32_1 : i32, i32, i32, i32, i32
  }
  func.func @transform_2(%arg0: i32, %arg1: i32, %arg2: i32) -> (i32, i32, i32) {
    %c0_i32 = arith.constant 0 : i32
    %c0_i32_0 = arith.constant 0 : i32
    %c0_i32_1 = arith.constant 0 : i32
    %c0_i32_2 = arith.constant 0 : i32
    return %c0_i32, %c0_i32_0, %c0_i32_1 : i32, i32, i32
  }
  func.func @transform_3(%arg0: i32, %arg1: i32, %arg2: i32) -> (i32, i32, i32, i32, i32) {
    %0 = arith.muli %arg1, %arg2 : i32
    %c0_i32 = arith.constant 0 : i32
    %c0_i32_0 = arith.constant 0 : i32
    %c0_i32_1 = arith.constant 0 : i32
    %c0_i32_2 = arith.constant 0 : i32
    return %arg0, %0, %c0_i32, %c0_i32_0, %c0_i32_1 : i32, i32, i32, i32, i32
  }
}

</mosaic_0001>

<bundles_post_ra>
// kernel: unet_up.1
= control target key start
LH: loop header
LB: loop body
LE: loop exit
PB: predicated region body
PF: predicated region fallthrough
CT: control target
= control target key end

     0   :  { %s2159_s12 = smov 0   ;;  %s2161_s13 = smov 0   ;;  %s3132_s0 = inlined_call_operand.vmem [shape: bf16[2,8,8,8], index: 0, kind: input, shape index: {}]   ;;  %s3133_s1 = inlined_call_operand.vmem [shape: f32[2,8,2,8,8], index: 1, kind: input, shape index: {}]   ;;  %s3134_s2 = inlined_call_operand.vmem [shape: bf16[4,32,4], index: 2, kind: input, shape index: {}]   ;;  %s3135_s3 = inlined_call_operand.vmem [shape: f32[2,8,2,8,16], index: 3, kind: output, shape index: {}]  }
   0x1   :  { %s2163_s14 = smov 0   ;;  %s2165_s15 = smov 0  }
   0x2   :  { %s2167_s16 = smov 0  }
   0x3 LB: > { %s28_s17 = sadd.s32 1, %s2123_s14  ;;  %s32_s18 = sadd.s32 1, %s2127_s15  ;;  %s2131_s16 = sphi %s2167_s16, %s13_s16   ;;  %s2127_s15 = sphi %s2165_s15, %s3152_s15   ;;  %s2123_s14 = sphi %s2163_s14, %s3151_s14   ;;  %s2119_s13 = sphi %s2161_s13, %s3150_s13   ;;  %s2115_s12 = sphi %s2159_s12, %s3149_s12  }
   0x4   : > { %p30_p0 = scmp.ge.s32.totalorder %s28_s17, 2  ;;  %p1830_p1 = scmp.ge.s32.totalorder %s2131_s16, 1 }
   0x5   : > { %p182_p2 = scmp.lt.s32.totalorder %s2131_s16, 5 }
   0x6   : > { %s3154_s17 = smov (%p30_p0, %s28_s17), 0  ;;  %s3156_s18 = smov (!%p30_p0, %s32_s18), %s2127_s15 }
   0x7   : > { %p183_p3 = pnand %p1830_p1, %p182_p2  ;;  %p34_p4 = scmp.ge.s32.totalorder %s3156_s18, 2 }
   0x9   : > { %s3158_s18 = smov (%p34_p4, %s3156_s18), 0  ;;  %186 = sbr.rel (%p183_p3) target bundleno = 716 (0x2cc), region = 32 }
  0x10   : > { %p223_p5 = scmp.lt.s32.totalorder %s2119_s13, 1  ;;  %vm406_vm0 = vcmask 1040384   ;;  %vm407_vm1 = vsmask.f32 256  ;;  %vm449_vm2 = vcmask 1043456   ;;  %v2083_v9 = vld [vmem:[%s3134_s2 + $0x10] sm:$0xff]  }
  0x11   : > { %vm450_vm3 = vsmask.f32 3328  ;;  %s2133_s5 = smov 8   ;;  %1986 = vmatprep.subr.bf16.mxu1 %v2083_v9  ;;  %v2084_v22 = vld [vmem:[%s3134_s2] sm:$0xff]   ;;  %s2134_s8 = smov 16   ;;  %v2085_v27 = vld [vmem:[%s3134_s2 + $0x18] sm:$0xff]   ;;  %vm2246_vm4 = vmand %vm406_vm0, %vm407_vm1 }
  0x12   : > { %s3160_s13 = smov (!%p223_p5, %s2119_s13), 1  ;;  %1987 = vmatpush3.bf16.msra.mxu1 %v2083_v9  ;;  %1974 = vmatprep.subr.bf16.mxu0 %v2084_v22  ;;  %vm2254_vm5 = vmand %vm449_vm2, %vm450_vm3  ;;  %v2086_v42 = vld [vmem:[%s3134_s2 + $0x8] sm:$0xff]   ;;  %v2419_v35 = vld [vmem:[%s3134_s2 + $0x20] sm:$0xff]   ;;  %vm520_vm6 = vcmask 64512   ;;  %vm533_vm7 = vcmask 130048   ;;  %vm542_vm8 = vcmask 195584  }
  0x13   : > { %s1947_s19 = sshll.u32 %s3160_s13, 5  ;;  %s1948_s20 = sshll.u32 %s3160_s13, 7  ;;  %1975 = vmatpush3.bf16.msra.mxu0 %v2084_v22  ;;  %1988 = vmatprep.subr.bf16.mxu1 %v2085_v27  ;;  %vm567_vm9 = vcmask 261120  }
  0x14   : > { %s2194_s23 = scalar_lea.vmem %s3132_s0, %s1947_s19  ;;  %s2199_s26 = scalar_lea.vmem %s3133_s1, %s1948_s20  ;;  %1976 = vmatprep.subr.bf16.mxu0 %v2086_v42 }
  0x15   : > { %s2204_s29 = scalar_lea.vmem %s3135_s3, %s1948_s20  ;;  %v258_v0 = vld [vmem:[%s2194_s23] sm:$0xf]  ;;  %v259_v1 = vld [vmem:[%s2194_s23 + $0x4] sm:$0xf]  ;;  %v260_v5 = vld [vmem:[%s2194_s23 + $0x8] sm:$0xf] }
  0x16   : > { %v271_v2 = vld [vmem:[%s2194_s23] sm:$0xf]  ;;  %v2209_v3 = vcombine.low %v258_v0, %v259_v1  ;;  %v2213_v6 = vld [vmem:[%s2194_s23 + $0xc] sm:$0xf]  ;;  %v1839_v7 = vcombine.low %v258_v0, %v258_v0  ;;  %v1840_v8 = vcombine.low %v259_v1, %v259_v1  ;;  %v2221_v11 = vcombine.low %v259_v1, %v260_v5  ;;  %s2135_s19 = smov 24   ;;  %1989 = vmatpush3.bf16.msra.mxu1 %v2085_v27  ;;  %p1911_p6 = scmp.ne.s32.totalorder %s2115_s12, 0 }
  0x17   : > { %v288_v4 = vmul.bf16 0.0, %v271_v2  ;;  %v2219_v10 = vcombine.low %v260_v5, %v2213_v6  ;;  %v1841_v12 = vcombine.low %v260_v5, %v260_v5  ;;  %v2225_v13 = vcombine.low %v2213_v6, %v2213_v6  ;;  %v2273_v50 = vld [vmem:[%s2194_s23 + $0x10] sm:$0xf]  ;;  %v2276_v51 = vld [vmem:[%s2194_s23 + $0x14] sm:$0xf]  ;;  %1977 = vmatpush3.bf16.msra.mxu0 %v2086_v42 }
  0x18   : > { %661 = vrot.lane.b32.xlu0 %v2209_v3, %s2133_s5  ;;  %v334_v16 = vshrl.u32 %v1839_v7, 16  ;;  %v337_v17 = vshll.u32 %v1839_v7, 16  ;;  %v341_v26 = vshrl.u32 %v1840_v8, 16  ;;  %v344_v31 = vshll.u32 %v1840_v8, 16  ;;  %v2290_v55 = vld [vmem:[%s2194_s23 + $0x18] sm:$0xf]  ;;  %1998 = vmatprep.subr.bf16.mxu0 %v2419_v35 }
  0x19   : > { %v2229_v14 = vcombine.low %v288_v4, %v288_v4  ;;  %v1856_v15 = vcombine.low %v288_v4, %v258_v0  ;;  %v348_v18 = vshrl.u32 %v1841_v12, 16  ;;  %v351_v19 = vshll.u32 %v1841_v12, 16  ;;  %v2293_v56 = vld [vmem:[%s2194_s23 + $0x1c] sm:$0xf] }
  0x1a   : > { %v355_v20 = vshrl.u32 %v2225_v13, 16  ;;  %v358_v21 = vshll.u32 %v2225_v13, 16  ;;  %v336_v25 = vrot.slane %v334_v16, 7  ;;  %v343_v34 = vrot.slane %v341_v26, 7 }
  0x1b   : > { %v327_v23 = vshrl.u32 %v2229_v14, 16  ;;  %v330_v24 = vshll.u32 %v2229_v14, 16  ;;  %498 = vrot.lane.b32.xlu1 %v1856_v15, %s2134_s8  ;;  %v350_v28 = vrot.slane %v348_v18, 7  ;;  %v425_v32 = vrot.slane %v351_v19, 1 }
  0x1c   : > { %v357_v29 = vrot.slane %v355_v20, 7  ;;  %663 = vrot.lane.b32.xlu0 %v2219_v10, %s2133_s5  ;;  %v339_v33 = vor.u32 %v337_v17, %v336_v25  ;;  %v421_v37 = vrot.slane %v337_v17, 1  ;;  %v423_v40 = vrot.slane %v344_v31, 1 }
  0x1d   : > { %v419_v36 = vrot.slane %v330_v24, 1  ;;  %v353_v38 = vor.u32 %v351_v19, %v350_v28  ;;  %v426_v41 = vor.u32 %v425_v32, %v348_v18  ;;  %v346_v43 = vor.u32 %v344_v31, %v343_v34 }
  0x1e   : > { %v360_v39 = vor.u32 %v358_v21, %v357_v29  ;;  %v410_v44 = vsel %vm2246_vm4, 0, %v339_v33  ;;  %v424_v48 = vor.u32 %v423_v40, %v341_v26  ;;  %v422_v49 = vor.u32 %v421_v37, %v334_v16  ;;  %v1837_v37 = vld [vmem:[%s2194_s23 + $0x1c] sm:$0xf] }
  0x1f   : > { %683 = vrot.lane.b32.xlu1 %v1856_v15, %s2135_s19  ;;  %v420_v45 = vor.u32 %v419_v36, %v327_v23  ;;  %v412_v46 = vsel %vm2246_vm4, 0, %v353_v38  ;;  %v411_v53 = vsel %vm2246_vm4, 0, %v346_v43  ;;  %v2287_v54 = vsel %vm2254_vm5, %v426_v41, 0 }
  0x20   : > { %v2270_v47 = vsel %vm2246_vm4, 0, %v360_v39  ;;  %500 = vrot.lane.b32.xlu0 %v2221_v11, %s2134_s8  ;;  %v2295_v57 = vcombine.low %v410_v44, %v411_v53  ;;  %v2299_v58 = vsel %vm2254_vm5, %v424_v48, 0  ;;  %v329_v60 = vrot.slane %v327_v23, 7 }
  0x21   : > { %v2281_v52 = vcombine.low %v412_v46, %v2270_v47  ;;  %v452_v59 = vsel %vm2254_vm5, %v420_v45, 0  ;;  %v1843_v61 = vcombine.low %v2273_v50, %v2273_v50  ;;  %v1844_v62 = vcombine.low %v2276_v51, %v2276_v51 }
  0x22   : > { %v2311_v63 = vcombine.low %v2299_v58, %v2287_v54  ;;  %v2315_v0 = vsel %vm2254_vm5, %v422_v49, 0  ;;  %v1845_v1 = vcombine.low %v2290_v55, %v2290_v55  ;;  %v1846_v2 = vcombine.low %v2293_v56, %v2293_v56 }
  0x23   : > { %488 = vrot.lane.b32.xlu1 %v2281_v52, %s2133_s5  ;;  %v332_v4 = vor.u32 %v330_v24, %v329_v60  ;;  %v362_v5 = vshrl.u32 %v1843_v61, 16  ;;  %v365_v7 = vshll.u32 %v1843_v61, 16  ;;  %v369_v8 = vshrl.u32 %v1844_v62, 16 }
  0x24   : > { %486 = vrot.lane.b32.xlu0 %v2295_v57, %s2133_s5  ;;  %v372_v9 = vshll.u32 %v1844_v62, 16  ;;  %v376_v12 = vshrl.u32 %v1845_v1, 16  ;;  %v379_v14 = vshll.u32 %v1845_v1, 16  ;;  %v383_v15 = vshrl.u32 %v1846_v2, 16 }
  0x25   : > { %v1874_v16 = vcombine.low %v452_v59, %v2315_v0  ;;  %v364_v17 = vrot.slane %v362_v5, 7  ;;  %v371_v18 = vrot.slane %v369_v8, 7  ;;  %v386_v19 = vshll.u32 %v1846_v2, 16 }
  0x26   : > { %v409_v22 = vsel %vm2246_vm4, 0, %v332_v4  ;;  %v378_v23 = vrot.slane %v376_v12, 7  ;;  %v385_v24 = vrot.slane %v383_v15, 7  ;;  %v1861_v25 = vcombine.low %v411_v53, %v412_v46 }
  0x27   : > { %685 = vrot.lane.b32.xlu1 %v2221_v11, %s2135_s19  ;;  %v367_v26 = vor.u32 %v365_v7, %v364_v17  ;;  %v374_v27 = vor.u32 %v372_v9, %v371_v18  ;;  %v1860_v31 = vcombine.low %v409_v22, %v410_v44  ;;  %v427_v34 = vrot.slane %v358_v21, 1 }
  0x28   : > { %677 = vrot.lane.b32.xlu0 %v2311_v63, %s2134_s8  ;;  %v381_v28 = vor.u32 %v379_v14, %v378_v23  ;;  %v388_v29 = vor.u32 %v386_v19, %v385_v24  ;;  %v429_v36 = vrot.slane %v365_v7, 1  ;;  %v2350_v41 = vcombine.low %v2273_v50, %v2276_v51 }
  0x29   : > { %v414_v32 = vsel %vm2246_vm4, 0, %v367_v26  ;;  %v415_v33 = vsel %vm2246_vm4, 0, %v374_v27  ;;  %v2352_v21 = vmul.bf16 0.0, %v1837_v37  ;;  %v428_v42 = vor.u32 %v427_v34, %v355_v20 }
  0x2a   : > { %v2339_v38 = vcombine.low %v414_v32, %v415_v33  ;;  %v416_v39 = vsel %vm2246_vm4, 0, %v381_v28  ;;  %v2345_v40 = vsel %vm2246_vm4, 0, %v388_v29  ;;  %v430_v43 = vor.u32 %v429_v36, %v362_v5 }
  0x2b   : > { %675 = vrot.lane.b32.xlu1 %v1874_v16, %s2134_s8  ;;  %v2359_v44 = vcombine.low %v416_v39, %v2345_v40  ;;  %v1847_v45 = vcombine.low %v2352_v21, %v2352_v21  ;;  %v435_v46 = vrot.slane %v386_v19, 1  ;;  %v431_v48 = vrot.slane %v372_v9, 1 }
  0x2c   : > { %514 = vrot.lane.b32.xlu0 %v1861_v25, %s2135_s19  ;;  %v433_v49 = vrot.slane %v379_v14, 1  ;;  %v2367_v13 = vcombine.low %v2213_v6, %v2273_v50  ;;  %v456_v59 = vsel %vm2254_vm5, %v428_v42, 0  ;;  %v457_v60 = vsel %vm2254_vm5, %v430_v43, 0 }
  0x2d   : > { %v390_v20 = vshrl.u32 %v1847_v45, 16  ;;  %v393_v53 = vshll.u32 %v1847_v45, 16  ;;  %v2377_v61 = vcombine.low %v2290_v55, %v2293_v56  ;;  %v436_v1 = vor.u32 %v435_v46, %v383_v15 }
  0x2e   : > { %v432_v6 = vor.u32 %v431_v48, %v369_v8  ;;  %v434_v50 = vor.u32 %v433_v49, %v376_v12  ;;  %v2381_v4 = vcombine.low %v456_v59, %v457_v60  ;;  %v2387_v9 = vcombine.low %v2276_v51, %v2290_v55 }
  0x2f   : > { %512 = vrot.lane.b32.xlu1 %v1860_v31, %s2135_s19  ;;  %v392_v62 = vrot.slane %v390_v20, 7  ;;  %v437_v2 = vrot.slane %v393_v53, 1  ;;  %v460_v8 = vsel %vm2254_vm5, %v436_v1, 0  ;;  %v1862_v30 = vcombine.low %v2270_v47, %v414_v32  ;;  %v2088_v47 = vld [vmem:[%s3134_s2 + $0x30] sm:$0xff]  }
  0x30   : > { %490 = vrot.lane.b32.xlu0 %v2339_v38, %s2133_s5  ;;  %v458_v15 = vsel %vm2254_vm5, %v432_v6, 0  ;;  %v459_v16 = vsel %vm2254_vm5, %v434_v50, 0  ;;  %v1863_v55 = vcombine.low %v415_v33, %v416_v39  ;;  %2010 = vmatprep.subr.bf16.mxu1 %v2088_v47  ;;  %v1870_v18 = vcombine.low %v2315_v0, %v2299_v58 }
  0x31   : > { %v395_v5 = vor.u32 %v393_v53, %v392_v62  ;;  %v438_v7 = vor.u32 %v437_v2, %v390_v20  ;;  %v2406_v51 = vcombine.low %v458_v15, %v459_v16  ;;  %v1871_v19 = vcombine.low %v2287_v54, %v456_v59 }
  0x32   : > { %v2455_v54 = vcombine.low %v2293_v56, %v2352_v21  ;;  %vm1107_vm10 = vcmask (!%p1911_p6), 25600   ;;  %vm1109_vm11 = vcmask (!%p1911_p6), 31744  }
  0x33   : > { %665 = vrot.lane.b32.xlu1 %v2350_v41, %s2133_s5  ;;  %v418_v14 = vsel %vm2246_vm4, 0, %v395_v5  ;;  %v461_v12 = vsel %vm2254_vm5, %v438_v7, 0 }
  0x34   : > { %492 = vrot.lane.b32.xlu0 %v2359_v44, %s2133_s5  ;;  %v2399_v17 = vcombine.low %v460_v8, %v461_v12  ;;  %v1889_v58 = vcombine.low %v2345_v40, %v418_v14  ;;  %v2090_v40 = vld [vmem:[%s3134_s2 + $0x38] sm:$0xff]  }
  0x37   : > { %502 = vrot.lane.b32.xlu1 %v2367_v13, %s2134_s8 }
  0x38   : > { %667 = vrot.lane.b32.xlu0 %v2377_v61, %s2133_s5 }
  0x3b   : > { %679 = vrot.lane.b32.xlu1 %v2381_v4, %s2134_s8 }
  0x3c   : > { %504 = vrot.lane.b32.xlu0 %v2387_v9, %s2134_s8 }
  0x3f   : > { %516 = vrot.lane.b32.xlu1 %v1862_v30, %s2135_s19 }
  0x40   : > { %681 = vrot.lane.b32.xlu0 %v2406_v51, %s2134_s8 }
  0x43   : > { %687 = vrot.lane.b32.xlu1 %v2367_v13, %s2135_s19 }
  0x44   : > { %518 = vrot.lane.b32.xlu0 %v1863_v55, %s2135_s19 }
  0x47   : > { %689 = vrot.lane.b32.xlu1 %v2387_v9, %s2135_s19 }
  0x48   : > { %813 = vrot.lane.b32.xlu0 %v1861_v25, %s2133_s5 }
  0x4b   : > { %958 = vrot.lane.b32.xlu1 %v2221_v11, %s2133_s5 }
  0x4c   : > { %815 = vrot.lane.b32.xlu0 %v1862_v30, %s2133_s5 }
  0x4f   : > { %821 = vrot.lane.b32.xlu1 %v2209_v3, %s2134_s8 }
  0x50   : > { %960 = vrot.lane.b32.xlu0 %v2367_v13, %s2133_s5 }
  0x53   : > { %966 = vrot.lane.b32.xlu1 %v1870_v18, %s2134_s8 }
  0x54   : > { %823 = vrot.lane.b32.xlu0 %v2219_v10, %s2134_s8 }
  0x57   : > { %829 = vrot.lane.b32.xlu1 %v2295_v57, %s2135_s19  ;;  %v2467_v57 = vcombine.low %v459_v16, %v460_v8 }
  0x58   : > { %968 = vrot.lane.b32.xlu0 %v1871_v19, %s2134_s8 }
  0x5b   : > { %974 = vrot.lane.b32.xlu1 %v2209_v3, %s2135_s19 }
  0x5c   : > { %831 = vrot.lane.b32.xlu0 %v2281_v52, %s2135_s19  ;;  %v2459_v52 = vcombine.low %v457_v60, %v458_v15 }
  0x5f   : > { %976 = vrot.lane.b32.xlu1 %v2219_v10, %s2135_s19 }
  0x60   : > { %817 = vrot.lane.b32.xlu0 %v1863_v55, %s2133_s5 }
  0x63   : > { %962 = vrot.lane.b32.xlu1 %v2387_v9, %s2133_s5 }
  0x64   : > { %819 = vrot.lane.b32.xlu0 %v1889_v58, %s2133_s5 }
  0x67   : > { %825 = vrot.lane.b32.xlu1 %v2350_v41, %s2134_s8 }
  0x68   : > { %964 = vrot.lane.b32.xlu0 %v2455_v54, %s2133_s5 }
  0x6b   : > { %970 = vrot.lane.b32.xlu1 %v2459_v52, %s2134_s8 }
  0x6c   : > { %827 = vrot.lane.b32.xlu0 %v2377_v61, %s2134_s8 }
  0x6f   : > { %833 = vrot.lane.b32.xlu1 %v2339_v38, %s2135_s19 }
  0x70   : > { %972 = vrot.lane.b32.xlu0 %v2467_v57, %s2134_s8 }
  0x73   : > { %978 = vrot.lane.b32.xlu1 %v2350_v41, %s2135_s19 }
  0x74   : > { %835 = vrot.lane.b32.xlu0 %v2359_v44, %s2135_s19  ;;  %v2089_v44 = vld [vmem:[%s3134_s2 + $0x28] sm:$0xff]  }
  0x77   : > { %980 = vrot.lane.b32.xlu1 %v2377_v61, %s2135_s19 }
  0x8a   : > { %v662_v56 = vpop.permute.xlu0 %661 }
  0x8b   : > { %v693_v31 = vsel %vm520_vm6, %v1870_v18, %v662_v56 }
  0x8d   : > { %v499_v0 = vpop.permute.xlu1 %498 }
  0x8e   : > { %v664_v22 = vpop.permute.xlu0 %663 }
  0x8f   : > { %v696_v29 = vsel %vm520_vm6, %v1871_v19, %v664_v22 }
  0x91   : > { %v684_v23 = vpop.permute.xlu1 %683 }
  0x92   : > { %v501_v24 = vpop.permute.xlu0 %500 }
  0x95   : > { %v489_v25 = vpop.permute.xlu1 %488 }
  0x96   : > { %v487_v26 = vpop.permute.xlu0 %486  ;;  %v526_v37 = vsel %vm520_vm6, %v2219_v10, %v489_v25 }
  0x97   : > { %v523_v34 = vsel %vm520_vm6, %v2209_v3, %v487_v26  ;;  %v537_v43 = vsel %vm533_vm7, %v526_v37, %v501_v24 }
  0x98   : > { %v535_v3 = vsel %vm533_vm7, %v523_v34, %v499_v0 }
  0x99   : > { %v686_v27 = vpop.permute.xlu1 %685 }
  0x9a   : > { %v678_v28 = vpop.permute.xlu0 %677 }
  0x9b   : > { %v706_v32 = vsel %vm533_vm7, %v696_v29, %v678_v28 }
  0x9c   : > { %v714_v21 = vsel %vm542_vm8, %v706_v32, %v686_v27 }
  0x9d   : > { %v676_v33 = vpop.permute.xlu1 %675 }
  0x9e   : > { %v704_v36 = vsel %vm533_vm7, %v693_v31, %v676_v33  ;;  %v515_v38 = vpop.permute.xlu0 %514 }
  0x9f   : > { %v712_v39 = vsel %vm542_vm8, %v704_v36, %v684_v23  ;;  %v546_v45 = vsel %vm542_vm8, %v537_v43, %v515_v38 }
  0xa0   : > { %1990 = vmatprep.mubr.msk.bf16.mxu1 %vm567_vm9, %v712_v39 }
  0xa1   : > { %v513_v42 = vpop.permute.xlu1 %512  ;;  %1991 = vmatmul.mubr.msk.bf16.vlgmr.msra.gmra.mrb[0].mxu1 %vm567_vm9, %v714_v21 }
  0xa2   : > { %v544_v10 = vsel %vm542_vm8, %v535_v3, %v513_v42  ;;  %2011 = vmatpush3.bf16.msra.mxu1 %v2088_v47  ;;  %v491_v46 = vpop.permute.xlu0 %490 }
  0xa3   : > { %1978 = vmatprep.mubr.msk.bf16.mxu0 %vm567_vm9, %v544_v10  ;;  %2012 = vmatprep.subr.bf16.mxu1 %v2090_v40  ;;  %v529_v62 = vsel %vm520_vm6, %v2350_v41, %v491_v46 }
  0xa4   : > { %1979 = vmatmul.mubr.msk.bf16.vlgmr.msra.gmra.mrb[0].mxu0 %vm567_vm9, %v546_v45 }
  0xa5   : > { %v666_v48 = vpop.permute.xlu1 %665  ;;  %1999 = vmatpush3.bf16.msra.mxu0 %v2419_v35 }
  0xa6   : > { %2000 = vmatprep.subr.bf16.mxu0 %v2089_v44  ;;  %2013 = vmatpush3.bf16.msra.mxu1 %v2090_v40  ;;  %v493_v49 = vpop.permute.xlu0 %492  ;;  %v699_v5 = vsel %vm520_vm6, %v2459_v52, %v666_v48 }
  0xa7   : > { %v532_v8 = vsel %vm520_vm6, %v2377_v61, %v493_v49 }
  0xa9   : > { %v503_v20 = vpop.permute.xlu1 %502  ;;  %2001 = vmatpush3.bf16.msra.mxu0 %v2089_v44 }
  0xaa   : > { %v668_v53 = vpop.permute.xlu0 %667  ;;  %v539_v1 = vsel %vm533_vm7, %v529_v62, %v503_v20 }
  0xab   : > { %v702_v16 = vsel %vm520_vm6, %v2467_v57, %v668_v53 }
  0xad   : > { %v680_v59 = vpop.permute.xlu1 %679 }
  0xae   : > { %v505_v60 = vpop.permute.xlu0 %504  ;;  %v708_v7 = vsel %vm533_vm7, %v699_v5, %v680_v59 }
  0xaf   : > { %v541_v41 = vsel %vm533_vm7, %v532_v8, %v505_v60 }
  0xb1   : > { %v517_v2 = vpop.permute.xlu1 %516 }
  0xb2   : > { %v548_v6 = vsel %vm542_vm8, %v539_v1, %v517_v2  ;;  %v682_v50 = vpop.permute.xlu0 %681 }
  0xb3   : > { %1982 = vmatprep.mubr.msk.bf16.mxu0 %vm567_vm9, %v548_v6  ;;  %v710_v55 = vsel %vm533_vm7, %v702_v16, %v682_v50 }
  0xb5   : > { %v688_v14 = vpop.permute.xlu1 %687 }
  0xb6   : > { %v716_v12 = vsel %vm542_vm8, %v708_v7, %v688_v14  ;;  %v519_v15 = vpop.permute.xlu0 %518 }
  0xb7   : > { %1994 = vmatprep.mubr.msk.bf16.mxu1 %vm567_vm9, %v716_v12  ;;  %v550_v30 = vsel %vm542_vm8, %v541_v41, %v519_v15 }
  0xb8   : > { %1983 = vmatmul.mubr.msk.bf16.gmra.mrb[4].mxu0 %vm567_vm9, %v550_v30 }
  0xb9   : > { %v690_v35 = vpop.permute.xlu1 %689 }
  0xba   : > { %v718_v47 = vsel %vm542_vm8, %v710_v55, %v690_v35  ;;  %v814_v61 = vpop.permute.xlu0 %813 }
  0xbb   : > { %1995 = vmatmul.mubr.msk.bf16.gmra.mrb[4].mxu1 %vm567_vm9, %v718_v47  ;;  %v839_v57 = vsel %vm520_vm6, %v2221_v11, %v814_v61 }
  0xbd   : > { %v959_v18 = vpop.permute.xlu1 %958 }
  0xbe   : > { %v816_v19 = vpop.permute.xlu0 %815  ;;  %v984_v26 = vsel %vm520_vm6, %v2311_v63, %v959_v18 }
  0xbf   : > { %v842_v29 = vsel %vm520_vm6, %v2367_v13, %v816_v19 }
  0xc1   : > { %v822_v58 = vpop.permute.xlu1 %821 }
  0xc2   : > { %v961_v52 = vpop.permute.xlu0 %960  ;;  %v850_v22 = vsel %vm533_vm7, %v839_v57, %v822_v58 }
  0xc3   : > { %v987_v33 = vsel %vm520_vm6, %v2381_v4, %v961_v52 }
  0xc5   : > { %v967_v56 = vpop.permute.xlu1 %966 }
  0xc6   : > { %v824_v0 = vpop.permute.xlu0 %823  ;;  %v995_v27 = vsel %vm533_vm7, %v984_v26, %v967_v56 }
  0xc7   : > { %v852_v11 = vsel %vm533_vm7, %v842_v29, %v824_v0 }
  0xc9   : > { %v830_v23 = vpop.permute.xlu1 %829 }
  0xca   : > { %v858_v24 = vsel %vm542_vm8, %v850_v22, %v830_v23  ;;  %v969_v25 = vpop.permute.xlu0 %968 }
  0xcb   : > { %2002 = vmatprep.mubr.msk.bf16.mxu0 %vm567_vm9, %v858_v24  ;;  %v997_v63 = vsel %vm533_vm7, %v987_v33, %v969_v25 }
  0xcd   : > { %v975_v28 = vpop.permute.xlu1 %974 }
  0xce   : > { %v1003_v31 = vsel %vm542_vm8, %v995_v27, %v975_v28  ;;  %v832_v32 = vpop.permute.xlu0 %831 }
  0xcf   : > { %2014 = vmatprep.mubr.msk.bf16.mxu1 %vm567_vm9, %v1003_v31  ;;  %v860_v34 = vsel %vm542_vm8, %v852_v11, %v832_v32  ;;  %v2136_v31 = vmov (!%p1911_p6), 0.0  }
  0xd0   : > { %2003 = vmatmul.mubr.msk.bf16.vlgmr.msra.gmra.mrb[8].mxu0 %vm567_vm9, %v860_v34  ;;  %1108 = vst.msk [vmem:[#allocation2] sm:$0x3] (!%p1911_p6), %vm1107_vm10, %v2136_v31 }
  0xd1   : > { %v977_v36 = vpop.permute.xlu1 %976 }
  0xd2   : > { %v1005_v37 = vsel %vm542_vm8, %v997_v63, %v977_v36  ;;  %v818_v13 = vpop.permute.xlu0 %817 }
  0xd3   : > { %2015 = vmatmul.mubr.msk.bf16.vlgmr.msra.gmra.mrb[8].mxu1 %vm567_vm9, %v1005_v37  ;;  %v845_v4 = vsel %vm520_vm6, %v2387_v9, %v818_v13 }
  0xd5   : > { %v963_v38 = vpop.permute.xlu1 %962 }
  0xd6   : > { %v820_v39 = vpop.permute.xlu0 %819  ;;  %v990_v46 = vsel %vm520_vm6, %v2406_v51, %v963_v38 }
  0xd7   : > { %v848_v20 = vsel %vm520_vm6, %v2455_v54, %v820_v39 }
  0xd9   : > { %v826_v40 = vpop.permute.xlu1 %825 }
  0xda   : > { %v965_v21 = vpop.permute.xlu0 %964  ;;  %v854_v43 = vsel %vm533_vm7, %v845_v4, %v826_v40 }
  0xdb   : > { %v993_v60 = vsel %vm520_vm6, %v2399_v17, %v965_v21 }
  0xdd   : > { %v971_v42 = vpop.permute.xlu1 %970 }
  0xde   : > { %v828_v3 = vpop.permute.xlu0 %827  ;;  %v999_v48 = vsel %vm533_vm7, %v990_v46, %v971_v42 }
  0xdf   : > { %v856_v9 = vsel %vm533_vm7, %v848_v20, %v828_v3 }
  0xe1   : > { %v834_v10 = vpop.permute.xlu1 %833 }
  0xe2   : > { %v862_v44 = vsel %vm542_vm8, %v854_v43, %v834_v10  ;;  %v973_v45 = vpop.permute.xlu0 %972 }
  0xe3   : > { %2006 = vmatprep.mubr.msk.bf16.mxu0 %vm567_vm9, %v862_v44  ;;  %v1001_v51 = vsel %vm533_vm7, %v993_v60, %v973_v45 }
  0xe5   : > { %v979_v49 = vpop.permute.xlu1 %978 }
  0xe6   : > { %v1007_v53 = vsel %vm542_vm8, %v999_v48, %v979_v49  ;;  %v836_v59 = vpop.permute.xlu0 %835 }
  0xe7   : > { %2018 = vmatprep.mubr.msk.bf16.mxu1 %vm567_vm9, %v1007_v53  ;;  %v864_v62 = vsel %vm542_vm8, %v856_v9, %v836_v59 }
  0xe8   : > { %2007 = vmatmul.mubr.msk.bf16.gmra.mrb[12].mxu0 %vm567_vm9, %v864_v62 }
  0xe9   : > { %v981_v1 = vpop.permute.xlu1 %980 }
  0xea   : > { %v1009_v2 = vsel %vm542_vm8, %v1001_v51, %v981_v1 }
  0xeb   : > { %2019 = vmatmul.mubr.msk.bf16.gmra.mrb[12].mxu1 %vm567_vm9, %v1009_v2 }
 0x174   : > { %v2564_v54 = vpop.f32.mrb[0].mxu1 }
 0x175   : > { %v2566_v6 = vpop.f32.mrb[1].mxu1  ;;  %v1165_v10 = vsel (!%p1911_p6), %vm1109_vm11, %v2564_v54, 0.0  ;;  %v1186_v62 = vmul.f32 (!%p1911_p6), %v2564_v54, %v2564_v54 }
 0x176   : > { %v2568_v50 = vpop.f32.mrb[2].mxu1  ;;  %v1162_v4 = vsel (!%p1911_p6), %vm1109_vm11, %v2566_v6, 0.0  ;;  %v1184_v59 = vmul.f32 (!%p1911_p6), %v2566_v6, %v2566_v6 }
 0x177   : > { %v2570_v5 = vpop.f32.mrb[0].mxu0  ;;  %v2572_v17 = vpop.f32.mrb[3].mxu1  ;;  %v1167_v53 = vsel (!%p1911_p6), %vm1109_vm11, %v2568_v50, 0.0  ;;  %v1187_v1 = vmul.f32 (!%p1911_p6), %v2568_v50, %v2568_v50 }
 0x178   : > { %v2574_v7 = vpop.f32.mrb[1].mxu0  ;;  %v1113_v63 = vsel (!%p1911_p6), %vm1109_vm11, %v2570_v5, 0.0  ;;  %v1134_v37 = vmul.f32 (!%p1911_p6), %v2570_v5, %v2570_v5  ;;  %v1163_v43 = vsel (!%p1911_p6), %vm1109_vm11, %v2572_v17, 0.0  ;;  %v1185_v60 = vmul.f32 (!%p1911_p6), %v2572_v17, %v2572_v17 }
 0x179   : > { %v2576_v14 = vpop.f32.mrb[2].mxu0  ;;  %v1110_v11 = vsel (!%p1911_p6), %vm1109_vm11, %v2574_v7, 0.0  ;;  %v1132_v33 = vmul.f32 (!%p1911_p6), %v2574_v7, %v2574_v7  ;;  %v1164_v46 = vadd.f32 (!%p1911_p6), %v1163_v43, %v1162_v4 }
 0x17a   : > { %v2578_v8 = vpop.f32.mrb[3].mxu0  ;;  %v1115_v40 = vsel (!%p1911_p6), %vm1109_vm11, %v2576_v14, 0.0  ;;  %v1135_v21 = vmul.f32 (!%p1911_p6), %v2576_v14, %v2576_v14  ;;  %v1143_v3 = vsel (!%p1911_p6), %vm1109_vm11, %v1134_v37, 0.0 }
 0x17b   : > { %v1111_v32 = vsel (!%p1911_p6), %vm1109_vm11, %v2578_v8, 0.0  ;;  %v1133_v36 = vmul.f32 (!%p1911_p6), %v2578_v8, %v2578_v8  ;;  %v1140_v38 = vsel (!%p1911_p6), %vm1109_vm11, %v1132_v33, 0.0  ;;  %v1166_v9 = vadd.f32 (!%p1911_p6), %v1165_v10, %v1164_v46 }
 0x17c   : > { %v1112_v34 = vadd.f32 (!%p1911_p6), %v1111_v32, %v1110_v11  ;;  %v1145_v20 = vsel (!%p1911_p6), %vm1109_vm11, %v1135_v21, 0.0  ;;  %v1197_v21 = vsel (!%p1911_p6), %vm1109_vm11, %v1187_v1, 0.0 }
 0x17d   : > { %v1141_v39 = vsel (!%p1911_p6), %vm1109_vm11, %v1133_v36, 0.0  ;;  %v1168_v32 = vadd.f32 (!%p1911_p6), %v1167_v53, %v1166_v9  ;;  %v1193_v36 = vsel (!%p1911_p6), %vm1109_vm11, %v1185_v60, 0.0 }
 0x17e   : > { %v1114_v13 = vadd.f32 (!%p1911_p6), %v1113_v63, %v1112_v34  ;;  %v1142_v42 = vadd.f32 (!%p1911_p6), %v1141_v39, %v1140_v38  ;;  %v1192_v63 = vsel (!%p1911_p6), %vm1109_vm11, %v1184_v59, 0.0  ;;  %v1195_v38 = vsel (!%p1911_p6), %vm1109_vm11, %v1186_v62, 0.0 }
 0x180   : > { %v1116_v44 = vadd.f32 (!%p1911_p6), %v1115_v40, %v1114_v13  ;;  %v1144_v45 = vadd.f32 (!%p1911_p6), %v1143_v3, %v1142_v42  ;;  %v1194_v13 = vadd.f32 (!%p1911_p6), %v1193_v36, %v1192_v63 }
 0x182   : > { %v1146_v11 = vadd.f32 (!%p1911_p6), %v1145_v20, %v1144_v45  ;;  %v1196_v43 = vadd.f32 (!%p1911_p6), %v1195_v38, %v1194_v13 }
 0x18b   : > { %v2580_v12 = vpop.f32.mrb[4].mxu0 }
 0x18c   : > { %v2582_v41 = vpop.f32.mrb[5].mxu0  ;;  %v1138_v3 = vmul.f32 (!%p1911_p6), %v2580_v12, %v2580_v12  ;;  %v1121_v9 = vsel (!%p1911_p6), %vm1109_vm11, %v2580_v12, 0.0 }
 0x18d   : > { %v2584_v15 = vpop.f32.mrb[6].mxu0  ;;  %v1117_v48 = vsel (!%p1911_p6), %vm1109_vm11, %v2582_v41, 0.0  ;;  %v1136_v49 = vmul.f32 (!%p1911_p6), %v2582_v41, %v2582_v41 }
 0x18e   : > { %v2586_v16 = vpop.f32.mrb[4].mxu1  ;;  %v2588_v30 = vpop.f32.mrb[7].mxu0  ;;  %v1118_v2 = vadd.f32 (!%p1911_p6), %v1117_v48, %v1116_v44  ;;  %v1139_v1 = vmul.f32 (!%p1911_p6), %v2584_v15, %v2584_v15 }
 0x18f   : > { %v2590_v55 = vpop.f32.mrb[5].mxu1  ;;  %v1119_v31 = vsel (!%p1911_p6), %vm1109_vm11, %v2588_v30, 0.0  ;;  %v1147_v33 = vsel (!%p1911_p6), %vm1109_vm11, %v1136_v49, 0.0  ;;  %v1137_v39 = vmul.f32 (!%p1911_p6), %v2588_v30, %v2588_v30  ;;  %v1198_v49 = vadd.f32 (!%p1911_p6), %v1197_v21, %v1196_v43 }
 0x190   : > { %v2592_v35 = vpop.f32.mrb[6].mxu1  ;;  %v1169_v51 = vsel (!%p1911_p6), %vm1109_vm11, %v2590_v55, 0.0  ;;  %v1188_v34 = vmul.f32 (!%p1911_p6), %v2590_v55, %v2590_v55  ;;  %v1120_v42 = vadd.f32 (!%p1911_p6), %v1119_v31, %v1118_v2  ;;  %v1148_v4 = vadd.f32 (!%p1911_p6), %v1147_v33, %v1146_v11 }
 0x191   : > { %v2594_v47 = vpop.f32.mrb[7].mxu1  ;;  %v1170_v37 = vadd.f32 (!%p1911_p6), %v1169_v51, %v1168_v32  ;;  %v1149_v59 = vsel (!%p1911_p6), %vm1109_vm11, %v1137_v39, 0.0  ;;  %v1173_v60 = vsel (!%p1911_p6), %vm1109_vm11, %v2586_v16, 0.0  ;;  %v1123_v51 = vsel (!%p1911_p6), %vm1109_vm11, %v2584_v15, 0.0 }
 0x192   : > { %v1171_v40 = vsel (!%p1911_p6), %vm1109_vm11, %v2594_v47, 0.0  ;;  %v1189_v10 = vmul.f32 (!%p1911_p6), %v2594_v47, %v2594_v47  ;;  %v1199_v44 = vsel (!%p1911_p6), %vm1109_vm11, %v1188_v34, 0.0  ;;  %v1151_v11 = vsel (!%p1911_p6), %vm1109_vm11, %v1138_v3, 0.0 }
 0x193   : > { %v1172_v48 = vadd.f32 (!%p1911_p6), %v1171_v40, %v1170_v37  ;;  %v1200_v2 = vadd.f32 (!%p1911_p6), %v1199_v44, %v1198_v49  ;;  %v1190_v32 = vmul.f32 (!%p1911_p6), %v2586_v16, %v2586_v16  ;;  %v1122_v63 = vadd.f32 (!%p1911_p6), %v1121_v9, %v1120_v42 }
 0x194   : > { %v1201_v33 = vsel (!%p1911_p6), %vm1109_vm11, %v1189_v10, 0.0  ;;  %v1150_v36 = vadd.f32 (!%p1911_p6), %v1149_v59, %v1148_v4  ;;  %v1175_v38 = vsel (!%p1911_p6), %vm1109_vm11, %v2592_v35, 0.0  ;;  %v1153_v3 = vsel (!%p1911_p6), %vm1109_vm11, %v1139_v1, 0.0 }
 0x195   : > { %v1174_v37 = vadd.f32 (!%p1911_p6), %v1173_v60, %v1172_v48  ;;  %v1202_v43 = vadd.f32 (!%p1911_p6), %v1201_v33, %v1200_v2  ;;  %v1191_v42 = vmul.f32 (!%p1911_p6), %v2592_v35, %v2592_v35  ;;  %v1203_v4 = vsel (!%p1911_p6), %vm1109_vm11, %v1190_v32, 0.0 }
 0x196   : > { %v1152_v48 = vadd.f32 (!%p1911_p6), %v1151_v11, %v1150_v36 }
 0x197   : > { %v1176_v49 = vadd.f32 (!%p1911_p6), %v1175_v38, %v1174_v37  ;;  %v1205_v2 = vsel (!%p1911_p6), %vm1109_vm11, %v1191_v42, 0.0 }
 0x198   : > { %v1154_v33 = vadd.f32 (!%p1911_p6), %v1153_v3, %v1152_v48 }
 0x199   : > { %v1177_v36 = vrot.slane (!%p1911_p6), %v1176_v49, 4 }
 0x19a   : > { %v1155_v48 = vrot.slane (!%p1911_p6), %v1154_v33, 4 }
 0x1a3   : > { %v2596_v61 = vpop.f32.mrb[8].mxu0 }
 0x1a4   : > { %v2598_v18 = vpop.f32.mrb[9].mxu0  ;;  %v1217_v53 = vsel (!%p1911_p6), %vm1109_vm11, %v2596_v61, 0.0  ;;  %v1238_v44 = vmul.f32 (!%p1911_p6), %v2596_v61, %v2596_v61 }
 0x1a5   : > { %v2600_v19 = vpop.f32.mrb[10].mxu0  ;;  %v1214_v45 = vsel (!%p1911_p6), %vm1109_vm11, %v2598_v18, 0.0  ;;  %v1236_v40 = vmul.f32 (!%p1911_p6), %v2598_v18, %v2598_v18 }
 0x1a6   : > { %v2602_v58 = vpop.f32.mrb[8].mxu1  ;;  %v2604_v52 = vpop.f32.mrb[11].mxu0  ;;  %v1219_v62 = vsel (!%p1911_p6), %vm1109_vm11, %v2600_v19, 0.0 }
 0x1a7   : > { %v2606_v56 = vpop.f32.mrb[9].mxu1  ;;  %v1215_v46 = vsel (!%p1911_p6), %vm1109_vm11, %v2604_v52, 0.0  ;;  %v1237_v21 = vmul.f32 (!%p1911_p6), %v2604_v52, %v2604_v52  ;;  %v1244_v59 = vsel (!%p1911_p6), %vm1109_vm11, %v1236_v40, 0.0 }
 0x1a8   : > { %v2608_v0 = vpop.f32.mrb[10].mxu1  ;;  %v1216_v20 = vadd.f32 (!%p1911_p6), %v1215_v46, %v1214_v45  ;;  %v1239_v45 = vmul.f32 (!%p1911_p6), %v2600_v19, %v2600_v19  ;;  %v1124_v46 = vadd.f32 (!%p1911_p6), %v1123_v51, %v1122_v63 }
 0x1a9   : > { %v2610_v57 = vpop.f32.mrb[11].mxu1  ;;  %v1245_v60 = vsel (!%p1911_p6), %vm1109_vm11, %v1237_v21, 0.0  ;;  %v1266_v21 = vsel (!%p1911_p6), %vm1109_vm11, %v2606_v56, 0.0 }
 0x1aa   : > { %v1218_v31 = vadd.f32 (!%p1911_p6), %v1217_v53, %v1216_v20  ;;  %v1246_v1 = vadd.f32 (!%p1911_p6), %v1245_v60, %v1244_v59  ;;  %v1249_v11 = vsel (!%p1911_p6), %vm1109_vm11, %v1239_v45, 0.0  ;;  %v1125_v32 = vrot.slane (!%p1911_p6), %v1124_v46, 4 }
 0x1ab   : > { %v1269_v45 = vsel (!%p1911_p6), %vm1109_vm11, %v2602_v58, 0.0 }
 0x1ac   : > { %v1220_v13 = vadd.f32 (!%p1911_p6), %v1219_v62, %v1218_v31  ;;  %v1204_v62 = vadd.f32 (!%p1911_p6), %v1203_v4, %v1202_v43  ;;  %v1247_v31 = vsel (!%p1911_p6), %vm1109_vm11, %v1238_v44, 0.0  ;;  %v1126_v42 = vadd.f32 (!%p1911_p6), %v1125_v32, %v1124_v46 }
 0x1ad   : > { %v1248_v63 = vadd.f32 (!%p1911_p6), %v1247_v31, %v1246_v1  ;;  %v1288_v1 = vmul.f32 (!%p1911_p6), %v2606_v56, %v2606_v56 }
 0x1ae   : > { %v1127_v31 = vrot.slane (!%p1911_p6), %v1126_v42, 2 }
 0x1af   : > { %v1250_v40 = vadd.f32 (!%p1911_p6), %v1249_v11, %v1248_v63  ;;  %v1156_v63 = vadd.f32 (!%p1911_p6), %v1155_v48, %v1154_v33 }
 0x1bb   : > { %v2612_v22 = vpop.f32.mrb[12].mxu0  ;;  %1103 = sbr.rel (%p1911_p6) target bundleno = 488 (0x1e8), region = 36 }
 0x1bc   : > { %v2614_v23 = vpop.f32.mrb[13].mxu0  ;;  %v1225_v53 = vsel (!%p1911_p6), %vm1109_vm11, %v2612_v22, 0.0 }
 0x1bd   : > { %v2616_v24 = vpop.f32.mrb[14].mxu0  ;;  %v1221_v34 = vsel (!%p1911_p6), %vm1109_vm11, %v2614_v23, 0.0  ;;  %v1240_v9 = vmul.f32 (!%p1911_p6), %v2614_v23, %v2614_v23 }
 0x1be   : > { %v2618_v25 = vpop.f32.mrb[12].mxu1  ;;  %v2620_v26 = vpop.f32.mrb[15].mxu0  ;;  %v1222_v10 = vadd.f32 (!%p1911_p6), %v1221_v34, %v1220_v13  ;;  %v1227_v37 = vsel (!%p1911_p6), %vm1109_vm11, %v2616_v24, 0.0  ;;  %v1242_v13 = vmul.f32 (!%p1911_p6), %v2612_v22, %v2612_v22  ;;  %v1243_v43 = vmul.f32 (!%p1911_p6), %v2616_v24, %v2616_v24 }
 0x1bf   : > { %3143 = vst [vmem:[#allocation3_spill] sm:$0xff] %v2618_v25  ;;  %v2622_v27 = vpop.f32.mrb[13].mxu1  ;;  %v1223_v39 = vsel (!%p1911_p6), %vm1109_vm11, %v2620_v26, 0.0  ;;  %v1241_v51 = vmul.f32 (!%p1911_p6), %v2620_v26, %v2620_v26  ;;  %v1251_v38 = vsel (!%p1911_p6), %vm1109_vm11, %v1240_v9, 0.0 }
 0x1c0   : > { %3144 = vst [vmem:[#allocation4_spill] sm:$0xff] %v2622_v27  ;;  %v2624_v28 = vpop.f32.mrb[14].mxu1  ;;  %v1224_v20 = vadd.f32 (!%p1911_p6), %v1223_v39, %v1222_v10  ;;  %v1206_v39 = vadd.f32 (!%p1911_p6), %v1205_v2, %v1204_v62  ;;  %v1267_v10 = vsel (!%p1911_p6), %vm1109_vm11, %v2610_v57, 0.0  ;;  %v1252_v44 = vadd.f32 (!%p1911_p6), %v1251_v38, %v1250_v40 }
 0x1c1   : > { %3145 = vst [vmem:[#allocation5_spill] sm:$0xff] %v2624_v28  ;;  %v2626_v29 = vpop.f32.mrb[15].mxu1  ;;  %v1253_v3 = vsel (!%p1911_p6), %vm1109_vm11, %v1241_v51, 0.0  ;;  %v1268_v9 = vadd.f32 (!%p1911_p6), %v1267_v10, %v1266_v21  ;;  %v1271_v62 = vsel (!%p1911_p6), %vm1109_vm11, %v2608_v0, 0.0  ;;  %v1257_v46 = vsel (!%p1911_p6), %vm1109_vm11, %v1243_v43, 0.0 }
 0x1c2   : > { %v1226_v34 = vadd.f32 %v1225_v53, %v1224_v20  ;;  %v1178_v20 = vadd.f32 %v1177_v36, %v1176_v49  ;;  %v1255_v53 = vsel %vm1109_vm11, %v1242_v13, 0.0  ;;  %v1207_v59 = vrot.slane %v1206_v39, 4 }
 0x1c3   : > { %v1254_v60 = vadd.f32 %v1253_v3, %v1252_v44  ;;  %v1270_v2 = vadd.f32 %v1269_v45, %v1268_v9  ;;  %v1289_v51 = vmul.f32 %v2610_v57, %v2610_v57  ;;  %v1290_v49 = vmul.f32 %v2602_v58, %v2602_v58 }
 0x1c4   : > { %v1228_v4 = vadd.f32 %v1227_v37, %v1226_v34  ;;  %v1273_v34 = vsel %vm1109_vm11, %v2622_v27, 0.0  ;;  %v1179_v36 = vrot.slane %v1178_v20, 2  ;;  %v1291_v13 = vmul.f32 %v2608_v0, %v2608_v0 }
 0x1c5   : > { %v1256_v32 = vadd.f32 %v1255_v53, %v1254_v60  ;;  %v1272_v37 = vadd.f32 %v1271_v62, %v1270_v2  ;;  %v1208_v38 = vadd.f32 %v1207_v59, %v1206_v39  ;;  %v1275_v21 = vsel %vm1109_vm11, %v2626_v29, 0.0 }
 0x1c6   : > { %v1229_v11 = vrot.slane %v1228_v4, 4  ;;  %v1296_v43 = vsel %vm1109_vm11, %v1288_v1, 0.0  ;;  %v1292_v10 = vmul.f32 %v2622_v27, %v2622_v27  ;;  %v1297_v44 = vsel %vm1109_vm11, %v1289_v51, 0.0 }
 0x1c7   : > { %v1258_v40 = vadd.f32 %v1257_v46, %v1256_v32  ;;  %v1274_v3 = vadd.f32 %v1273_v34, %v1272_v37  ;;  %v1299_v33 = vsel %vm1109_vm11, %v1290_v49, 0.0  ;;  %v1277_v53 = vsel %vm1109_vm11, %v2618_v25, 0.0 }
 0x1c8   : > { %v1230_v45 = vadd.f32 %v1229_v11, %v1228_v4  ;;  %v1298_v39 = vadd.f32 %v1297_v44, %v1296_v43  ;;  %v1157_v9 = vrot.slane %v1156_v63, 2  ;;  %v1293_v60 = vmul.f32 %v2626_v29, %v2626_v29 }
 0x1c9   : > { %v1259_v48 = vrot.slane %v1258_v40, 4  ;;  %v1276_v59 = vadd.f32 %v1275_v21, %v1274_v3  ;;  %v1301_v62 = vsel %vm1109_vm11, %v1291_v13, 0.0  ;;  %v1209_v1 = vrot.slane %v1208_v38, 2 }
 0x1ca   : > { %v1279_v2 = vsel %vm1109_vm11, %v2624_v28, 0.0  ;;  %v1300_v51 = vadd.f32 %v1299_v33, %v1298_v39  ;;  %v1294_v4 = vmul.f32 %v2618_v25, %v2618_v25  ;;  %v1303_v11 = vsel %vm1109_vm11, %v1292_v10, 0.0 }
 0x1cb   : > { %v1260_v46 = vadd.f32 %v1259_v48, %v1258_v40  ;;  %v1278_v49 = vadd.f32 %v1277_v53, %v1276_v59  ;;  %v1128_v32 = vadd.f32 %v1127_v31, %v1126_v42  ;;  %v1180_v34 = vadd.f32 %v1179_v36, %v1178_v20 }
 0x1cc   : > { %v1231_v37 = vrot.slane %v1230_v45, 2  ;;  %v1302_v21 = vadd.f32 %v1301_v62, %v1300_v51  ;;  %v1295_v13 = vmul.f32 %v2624_v28, %v2624_v28  ;;  %v1305_v40 = vsel %vm1109_vm11, %v1293_v60, 0.0 }
 0x1cd   : > { %v1280_v43 = vadd.f32 %v1279_v2, %v1278_v49  ;;  %v1158_v3 = vadd.f32 %v1157_v9, %v1156_v63  ;;  %v1210_v44 = vadd.f32 %v1209_v1, %v1208_v38  ;;  %v1261_v48 = vrot.slane %v1260_v46, 2 }
 0x1ce   : > { %v1304_v33 = vadd.f32 %v1303_v11, %v1302_v21  ;;  %v1307_v39 = vsel %vm1109_vm11, %v1294_v4, 0.0  ;;  %v1129_v59 = vrot.slane %v1128_v32, 1  ;;  %v1181_v25 = vrot.slane %v1180_v34, 1 }
 0x1cf   : > { %v1281_v53 = vrot.slane %v1280_v43, 4  ;;  %v1232_v10 = vadd.f32 %v1231_v37, %v1230_v45  ;;  %v1309_v31 = vsel %vm1109_vm11, %v1295_v13, 0.0  ;;  %v1159_v36 = vrot.slane %v1158_v3, 1 }
 0x1d0   : > { %v1306_v42 = vadd.f32 %v1305_v40, %v1304_v33  ;;  %v1211_v62 = vrot.slane %v1210_v44, 1  ;;  %v1262_v2 = vadd.f32 %v1261_v48, %v1260_v46  ;;  %v1130_v60 = vadd.f32 %v1129_v59, %v1128_v32 }
 0x1d1   : > { %v1282_v20 = vadd.f32 %v1281_v53, %v1280_v43  ;;  %v1182_v63 = vadd.f32 %v1181_v25, %v1180_v34  ;;  %v1233_v38 = vrot.slane %v1232_v10, 1  ;;  %v1160_v11 = vadd.f32 %v1159_v36, %v1158_v3 }
 0x1d2   : > { %v1308_v51 = vadd.f32 %v1307_v39, %v1306_v42  ;;  %v1212_v21 = vadd.f32 %v1211_v62, %v1210_v44  ;;  %v1263_v4 = vrot.slane %v1262_v2, 1  ;;  %v1318_v42 = vld [vmem:[#allocation2] sm:$0x3] }
 0x1d3   : > { %v1283_v49 = vrot.slane %v1282_v20, 2  ;;  %v1183_v27 = vadd.f32 %v1182_v63, %v1130_v60  ;;  %v1234_v45 = vadd.f32 %v1233_v38, %v1232_v10 }
 0x1d4   : > { %v1310_v9 = vadd.f32 %v1309_v31, %v1308_v51  ;;  %v1213_v40 = vadd.f32 %v1212_v21, %v1160_v11  ;;  %v1264_v13 = vadd.f32 %v1263_v4, %v1262_v2 }
 0x1d5   : > { %v1284_v1 = vadd.f32 %v1283_v49, %v1282_v20  ;;  %v1235_v53 = vadd.f32 %v1234_v45, %v1183_v27 }
 0x1d6   : > { %v1311_v28 = vrot.slane %v1310_v9, 4  ;;  %v1265_v39 = vadd.f32 %v1264_v13, %v1213_v40 }
 0x1d7   : > { %v1285_v37 = vrot.slane %v1284_v1, 1 }
 0x1d8   : > { %v1312_v43 = vadd.f32 %v1311_v28, %v1310_v9 }
 0x1d9   : > { %v1286_v46 = vadd.f32 %v1285_v37, %v1284_v1 }
 0x1da   : > { %v1313_v33 = vrot.slane %v1312_v43, 2 }
 0x1db   : > { %v1287_v25 = vadd.f32 %v1286_v46, %v1235_v53 }
 0x1dc   : > { %v1314_v48 = vadd.f32 %v1313_v33, %v1312_v43 }
 0x1de   : > { %v1315_v32 = vrot.slane %v1314_v48, 1 }
 0x1e0   : > { %v1316_v34 = vadd.f32 %v1315_v32, %v1314_v48 }
 0x1e2   : > { %v1317_v59 = vadd.f32 %v1316_v34, %v1265_v39 }
 0x1e4   : > { %v1320_v3 = vsel %vm406_vm0, %v1287_v25, %v1317_v59 }
 0x1e5   : > { %v1321_v44 = vadd.f32 %v1320_v3, %v1318_v42 }
 0x1e7   : > { %1323 = vst.msk [vmem:[#allocation2] sm:$0x3] %vm1107_vm10, %v1321_v44 }
 0x1e8 PF: > { %p1912_p7 = scmp.ne.s32.totalorder %s2115_s12, 1 }
 0x1e9   : > { %v2794_v27 = vld [vmem:[%s2199_s26 + $0x20] sm:$0xff] (!%p1912_p7)  ;;  %s2137_s30 = smov (!%p1912_p7), 4   ;;  %v2804_v20 = vld [vmem:[%s2199_s26 + $0x30] sm:$0xff] (!%p1912_p7)  ;;  %v1354_v60 = vlaneseq (!%p1912_p7)  ;;  %s2138_s12 = smov (!%p1912_p7), 8   ;;  %vm1386_vm12 = vcmask (!%p1912_p7), 31744   ;;  %vm1427_vm13 = vcmask (!%p1912_p7), 64544  }
 0x1ea   : > { %1327 = sbr.rel (%p1912_p7) target bundleno = 716 (0x2cc), region = 44  ;;  %v2797_v28 = vld [vmem:[%s2199_s26] sm:$0xff] (!%p1912_p7)  ;;  %1407 = vrot.lane.b32.xlu1 (!%p1912_p7), %v2794_v27, %s2137_s30  ;;  %v2807_v31 = vld [vmem:[%s2199_s26 + $0x10] sm:$0xff] (!%p1912_p7)  ;;  %vm1492_vm14 = vcmask (!%p1912_p7), 97344   ;;  %vm1525_vm15 = vcmask (!%p1912_p7), 130144  }
 0x1eb   : > { %1403 = vrot.lane.b32.xlu0 (!%p1912_p7), %v2797_v28, %s2137_s30  ;;  %v2814_v2 = vld [vmem:[%s2199_s26 + $0x50] sm:$0xff] (!%p1912_p7)  ;;  %v2817_v51 = vld [vmem:[%s2199_s26 + $0x40] sm:$0xff] (!%p1912_p7)  ;;  %v1355_v11 = vshrl.u32 (!%p1912_p7), %v1354_v60, 7 }
 0x1ec   : > { %v2824_v38 = vld [vmem:[%s2199_s26 + $0x70] sm:$0xff] (!%p1912_p7)  ;;  %v2827_v9 = vld [vmem:[%s2199_s26 + $0x60] sm:$0xff] (!%p1912_p7) }
 0x1ed   : > { %v1356_v4 = vsub.s32 (!%p1912_p7), 0, %v1355_v11  ;;  %v1368_v37 = vsub.s32 (!%p1912_p7), 1, %v1355_v11 }
 0x1ee   : > { %v1328_v10 = vld [vmem:[#allocation2] sm:$0x3] (!%p1912_p7)  ;;  %1409 = vrot.lane.b32.xlu1 (!%p1912_p7), %v2804_v20, %s2137_s30 }
 0x1ef   : > { %v1329_v36 = vmul.f32 (!%p1912_p7), 0.00390625, %v1328_v10  ;;  %1405 = vrot.lane.b32.xlu0 (!%p1912_p7), %v2807_v31, %s2137_s30 }
 0x1f1   : > { %v1330_v62 = vmul.f32 %v1329_v36, %v1329_v36  ;;  %v2833_v45 = vrot.slane %v1329_v36, %v1356_v4 }
 0x1f2   : > { %1413 = vrot.lane.b32.xlu1 %v2814_v2, %s2137_s30 }
 0x1f3   : > { %v1332_v49 = vrot.slane %v1330_v62, 7  ;;  %1411 = vrot.lane.b32.xlu0 %v2817_v51, %s2137_s30  ;;  %v1437_v43 = vsub.f32 %v2572_v17, %v2833_v45  ;;  %v1436_v40 = vsub.f32 %v2566_v6, %v2833_v45  ;;  %v1439_v13 = vsub.f32 %v2568_v50, %v2833_v45 }
 0x1f4   : > { %v1438_v33 = vsub.f32 %v2564_v54, %v2833_v45  ;;  %v1441_v48 = vsub.f32 %v2594_v47, %v2833_v45  ;;  %v1440_v39 = vsub.f32 %v2590_v55, %v2833_v45  ;;  %v1443_v17 = vsub.f32 %v2592_v35, %v2833_v45 }
 0x1f5   : > { %v1334_v63 = vsub.f32 %v1329_v36, %v1332_v49  ;;  %v1442_v6 = vsub.f32 %v2586_v16, %v2833_v45  ;;  %v1360_v47 = vsub.f32 %v2570_v5, %v2833_v45  ;;  %v1358_v16 = vsub.f32 %v2574_v7, %v2833_v45 }
 0x1f6   : > { %1417 = vrot.lane.b32.xlu1 %v2824_v38, %s2137_s30  ;;  %v1361_v5 = vsub.f32 %v2576_v14, %v2833_v45  ;;  %v1359_v36 = vsub.f32 %v2578_v8, %v2833_v45  ;;  %v1363_v62 = vsub.f32 %v2588_v30, %v2833_v45  ;;  %v1362_v7 = vsub.f32 %v2582_v41, %v2833_v45 }
 0x1f7   : > { %v1335_v1 = vmax.f32 %v1334_v63, 0.0  ;;  %1415 = vrot.lane.b32.xlu0 %v2827_v9, %s2137_s30  ;;  %v1365_v49 = vsub.f32 %v2584_v15, %v2833_v45  ;;  %v1364_v60 = vsub.f32 %v2580_v12, %v2833_v45 }
 0x1f9   : > { %v1336_v21 = vadd.f32 1e-05, %v1335_v1 }
 0x1fb   : > { %2091 = vrsqrt.f32 %v1336_v21 }
 0x205   : > { %v2092_v53 = vpop.eup %2091 }
 0x206   : > { %v2843_v46 = vrot.slane %v2092_v53, %v1368_v37 }
 0x208   : > { %v1445_v50 = vmul.f32 %v1437_v43, %v2843_v46  ;;  %v1444_v32 = vmul.f32 %v1436_v40, %v2843_v46  ;;  %v1447_v54 = vmul.f32 %v1439_v13, %v2843_v46  ;;  %v1446_v25 = vmul.f32 %v1438_v33, %v2843_v46 }
 0x209   : > { %v1449_v55 = vmul.f32 %v1441_v48, %v2843_v46  ;;  %v1448_v35 = vmul.f32 %v1440_v39, %v2843_v46  ;;  %v1451_v42 = vmul.f32 %v1443_v17, %v2843_v46  ;;  %v1450_v10 = vmul.f32 %v1442_v6, %v2843_v46 }
 0x20a   : > { %v1453_v34 = vmax.f32 %v1445_v50, 0.0  ;;  %v1452_v59 = vmax.f32 %v1444_v32, 0.0  ;;  %v1455_v3 = vmax.f32 %v1447_v54, 0.0  ;;  %v1454_v44 = vmax.f32 %v1446_v25, 0.0 }
 0x20b   : > { %v1457_v63 = vmax.f32 %v1449_v55, 0.0  ;;  %v1456_v1 = vmax.f32 %v1448_v35, 0.0  ;;  %v1459_v11 = vmax.f32 %v1451_v42, 0.0  ;;  %v1458_v14 = vmax.f32 %v1450_v10, 0.0 }
 0x20c   : > { %1470 = vrot.lane.b32.xlu1 %v1453_v34, %s2138_s12  ;;  %1468 = vrot.lane.b32.xlu0 %v1452_v59, %s2138_s12  ;;  %v1372_v8 = vmul.f32 %v2843_v46, %v1360_v47  ;;  %v1370_v30 = vmul.f32 %v2843_v46, %v1358_v16  ;;  %v1373_v41 = vmul.f32 %v2843_v46, %v1361_v5  ;;  %v1341_v5 = vld [vmem:[%s2199_s26 + $0x18] sm:$0xff] }
 0x20d   : > { %v1371_v15 = vmul.f32 %v2843_v46, %v1359_v36  ;;  %v1375_v12 = vmul.f32 %v2843_v46, %v1363_v62  ;;  %v1374_v21 = vmul.f32 %v2843_v46, %v1362_v7  ;;  %v1377_v4 = vmul.f32 %v2843_v46, %v1365_v49  ;;  %v1339_v36 = vld [vmem:[%s2199_s26 + $0x8] sm:$0xff] }
 0x20e   : > { %v1380_v37 = vmax.f32 %v1372_v8, 0.0  ;;  %v1378_v43 = vmax.f32 %v1370_v30, 0.0  ;;  %v1381_v40 = vmax.f32 %v1373_v41, 0.0  ;;  %v1376_v13 = vmul.f32 %v2843_v46, %v1364_v60  ;;  %v1343_v7 = vld [vmem:[%s2199_s26 + $0x28] sm:$0xff]  ;;  %v1349_v60 = vld [vmem:[%s2199_s26 + $0x58] sm:$0xff] }
 0x20f   : > { %v1379_v33 = vmax.f32 %v1371_v15, 0.0  ;;  %v1383_v53 = vmax.f32 %v1375_v12, 0.0  ;;  %v1382_v48 = vmax.f32 %v1374_v21, 0.0  ;;  %v1385_v39 = vmax.f32 %v1377_v4, 0.0  ;;  %v1351_v30 = vld [vmem:[%s2199_s26 + $0x68] sm:$0xff] }
 0x210   : > { %1474 = vrot.lane.b32.xlu1 %v1455_v3, %s2138_s12  ;;  %1472 = vrot.lane.b32.xlu0 %v1454_v44, %s2138_s12  ;;  %1389 = vst.msk [vmem:[%s2204_s29 + $0x20] sm:$0xff] %vm1386_vm12, %v1380_v37  ;;  %1387 = vst.msk [vmem:[%s2204_s29] sm:$0xff] %vm1386_vm12, %v1378_v43  ;;  %v1384_v17 = vmax.f32 %v1376_v13, 0.0  ;;  %v1535_v6 = vsub.f32 %v2604_v52, %v2833_v45  ;;  %v1534_v50 = vsub.f32 %v2598_v18, %v2833_v45  ;;  %v3146_v41 = vld [vmem:[#allocation4_spill] sm:$0xff]  ;;  %v3148_v43 = vld [vmem:[#allocation3_spill] sm:$0xff] }
 0x211   : > { %1390 = vst.msk [vmem:[%s2204_s29 + $0x30] sm:$0xff] %vm1386_vm12, %v1381_v40  ;;  %v1537_v32 = vsub.f32 %v2600_v19, %v2833_v45  ;;  %1388 = vst.msk [vmem:[%s2204_s29 + $0x10] sm:$0xff] %vm1386_vm12, %v1379_v33  ;;  %v1536_v54 = vsub.f32 %v2596_v61, %v2833_v45  ;;  %v1539_v52 = vsub.f32 %v2620_v26, %v2833_v45 }
 0x212   : > { %1392 = vst.msk [vmem:[%s2204_s29 + $0x50] sm:$0xff] %vm1386_vm12, %v1383_v53  ;;  %1391 = vst.msk [vmem:[%s2204_s29 + $0x40] sm:$0xff] %vm1386_vm12, %v1382_v48  ;;  %v1538_v18 = vsub.f32 %v2614_v23, %v2833_v45  ;;  %v1543_v19 = vmul.f32 %v1535_v6, %v2843_v46  ;;  %v1542_v25 = vmul.f32 %v1534_v50, %v2843_v46 }
 0x213   : > { %1394 = vst.msk [vmem:[%s2204_s29 + $0x70] sm:$0xff] %vm1386_vm12, %v1385_v39  ;;  %1393 = vst.msk [vmem:[%s2204_s29 + $0x60] sm:$0xff] %vm1386_vm12, %v1384_v17  ;;  %v1545_v34 = vmul.f32 %v1537_v32, %v2843_v46  ;;  %v1544_v59 = vmul.f32 %v1536_v54, %v2843_v46  ;;  %v1547_v61 = vmul.f32 %v1539_v52, %v2843_v46 }
 0x214   : > { %1478 = vrot.lane.b32.xlu1 %v1457_v63, %s2138_s12  ;;  %1476 = vrot.lane.b32.xlu0 %v1456_v1, %s2138_s12  ;;  %v1546_v26 = vmul.f32 %v1538_v18, %v2843_v46  ;;  %v1551_v23 = vmax.f32 %v1543_v19, 0.0  ;;  %v1550_v47 = vmax.f32 %v1542_v25, 0.0  ;;  %v1541_v35 = vsub.f32 %v2616_v24, %v2833_v45  ;;  %v1347_v63 = vld [vmem:[%s2199_s26 + $0x48] sm:$0xff] }
 0x215   : > { %v1553_v55 = vmax.f32 %v1545_v34, 0.0  ;;  %v1552_v42 = vmax.f32 %v1544_v59, 0.0  ;;  %v1555_v16 = vmax.f32 %v1547_v61, 0.0  ;;  %v1540_v44 = vsub.f32 %v2612_v22, %v2833_v45 }
 0x216   : > { %v1554_v3 = vmax.f32 %v1546_v26, 0.0  ;;  %1914 = vst.msk [vmem:[%s2204_s29 + $0x18] sm:$0xff] %vm1386_vm12, %v1551_v23  ;;  %1913 = vst.msk [vmem:[%s2204_s29 + $0x8] sm:$0xff] %vm1386_vm12, %v1550_v47  ;;  %v1549_v10 = vmul.f32 %v1541_v35, %v2843_v46  ;;  %v1607_v49 = vsub.f32 %v2606_v56, %v2833_v45  ;;  %v1610_v1 = vsub.f32 %v2608_v0, %v2833_v45 }
 0x217   : > { %1916 = vst.msk [vmem:[%s2204_s29 + $0x38] sm:$0xff] %vm1386_vm12, %v1553_v55  ;;  %1915 = vst.msk [vmem:[%s2204_s29 + $0x28] sm:$0xff] %vm1386_vm12, %v1552_v42  ;;  %v1548_v24 = vmul.f32 %v1540_v44, %v2843_v46  ;;  %v1609_v8 = vsub.f32 %v2602_v58, %v2833_v45  ;;  %v1612_v56 = vsub.f32 %v2626_v29, %v2833_v45  ;;  %v3147_v58 = vld [vmem:[#allocation5_spill] sm:$0xff] }
 0x218   : > { %1482 = vrot.lane.b32.xlu1 %v1459_v11, %s2138_s12  ;;  %1480 = vrot.lane.b32.xlu0 %v1458_v14, %s2138_s12  ;;  %1918 = vst.msk [vmem:[%s2204_s29 + $0x58] sm:$0xff] %vm1386_vm12, %v1555_v16  ;;  %1917 = vst.msk [vmem:[%s2204_s29 + $0x48] sm:$0xff] %vm1386_vm12, %v1554_v3  ;;  %v1557_v22 = vmax.f32 %v1549_v10, 0.0  ;;  %v1615_v14 = vmul.f32 %v1607_v49, %v2843_v46  ;;  %v1611_v15 = vsub.f32 %v3146_v41, %v2833_v45 }
 0x219   : > { %v1556_v62 = vmax.f32 %v1548_v24, 0.0  ;;  %v1618_v21 = vmul.f32 %v1610_v1, %v2843_v46  ;;  %v1617_v4 = vmul.f32 %v1609_v8, %v2843_v46  ;;  %v1614_v37 = vsub.f32 %v3147_v58, %v2833_v45 }
 0x21a   : > { %1920 = vst.msk [vmem:[%s2204_s29 + $0x78] sm:$0xff] %vm1386_vm12, %v1557_v22  ;;  %v1623_v12 = vmax.f32 %v1615_v14, 0.0  ;;  %v1613_v40 = vsub.f32 %v3148_v43, %v2833_v45  ;;  %v1620_v33 = vmul.f32 %v1612_v56, %v2843_v46  ;;  %v1619_v53 = vmul.f32 %v1611_v15, %v2843_v46 }
 0x21b   : > { %1919 = vst.msk [vmem:[%s2204_s29 + $0x68] sm:$0xff] %vm1386_vm12, %v1556_v62  ;;  %v1626_v29 = vmax.f32 %v1618_v21, 0.0  ;;  %v1625_v13 = vmax.f32 %v1617_v4, 0.0  ;;  %v1622_v17 = vmul.f32 %v1614_v37, %v2843_v46 }
 0x21c   : > { %1503 = vrot.lane.b32.xlu1 %v2807_v31, %s2138_s12  ;;  %1501 = vrot.lane.b32.xlu0 %v2797_v28, %s2138_s12  ;;  %v1345_v31 = vld [vmem:[%s2199_s26 + $0x38] sm:$0xff]  ;;  %v1608_v28 = vsub.f32 %v2610_v57, %v2833_v45  ;;  %v1628_v48 = vmax.f32 %v1620_v33, 0.0  ;;  %v1627_v39 = vmax.f32 %v1619_v53, 0.0  ;;  %v1621_v45 = vmul.f32 %v1613_v40, %v2843_v46 }
 0x21d   : > { %v1353_v57 = vld [vmem:[%s2199_s26 + $0x78] sm:$0xff]  ;;  %v1630_v6 = vmax.f32 %v1622_v17, 0.0 }
 0x21e   : > { %v1616_v11 = vmul.f32 %v1608_v28, %v2843_v46  ;;  %v1629_v50 = vmax.f32 %v1621_v45, 0.0 }
 0x220   : > { %1577 = vrot.lane.b32.xlu1 %v1341_v5, %s2137_s30  ;;  %1575 = vrot.lane.b32.xlu0 %v1339_v36, %s2137_s30  ;;  %v1624_v0 = vmax.f32 %v1616_v11, 0.0 }
 0x224   : > { %1581 = vrot.lane.b32.xlu1 %v1345_v31, %s2137_s30  ;;  %1579 = vrot.lane.b32.xlu0 %v1343_v7, %s2137_s30 }
 0x228   : > { %1585 = vrot.lane.b32.xlu1 %v1349_v60, %s2137_s30  ;;  %1583 = vrot.lane.b32.xlu0 %v1347_v63, %s2137_s30 }
 0x22c   : > { %1589 = vrot.lane.b32.xlu1 %v1353_v57, %s2137_s30  ;;  %1587 = vrot.lane.b32.xlu0 %v1351_v30, %s2137_s30 }
 0x230   : > { %1641 = vrot.lane.b32.xlu1 %v1624_v0, %s2138_s12  ;;  %1639 = vrot.lane.b32.xlu0 %v1623_v12, %s2138_s12 }
 0x234   : > { %1645 = vrot.lane.b32.xlu1 %v1626_v29, %s2138_s12  ;;  %1643 = vrot.lane.b32.xlu0 %v1625_v13, %s2138_s12 }
 0x238   : > { %1649 = vrot.lane.b32.xlu1 %v1628_v48, %s2138_s12  ;;  %1647 = vrot.lane.b32.xlu0 %v1627_v39, %s2138_s12 }
 0x23c   : > { %1653 = vrot.lane.b32.xlu1 %v1630_v6, %s2138_s12  ;;  %1651 = vrot.lane.b32.xlu0 %v1629_v50, %s2138_s12 }
 0x240   : > { %1507 = vrot.lane.b32.xlu1 %v2804_v20, %s2138_s12  ;;  %1505 = vrot.lane.b32.xlu0 %v2794_v27, %s2138_s12 }
 0x244   : > { %1511 = vrot.lane.b32.xlu1 %v2814_v2, %s2138_s12  ;;  %1509 = vrot.lane.b32.xlu0 %v2817_v51, %s2138_s12 }
 0x248   : > { %1515 = vrot.lane.b32.xlu1 %v2824_v38, %s2138_s12  ;;  %1513 = vrot.lane.b32.xlu0 %v2827_v9, %s2138_s12 }
 0x24c   : > { %1673 = vrot.lane.b32.xlu1 %v1341_v5, %s2138_s12  ;;  %1671 = vrot.lane.b32.xlu0 %v1339_v36, %s2138_s12 }
 0x250   : > { %1677 = vrot.lane.b32.xlu1 %v1345_v31, %s2138_s12  ;;  %1675 = vrot.lane.b32.xlu0 %v1343_v7, %s2138_s12 }
 0x254   : > { %1681 = vrot.lane.b32.xlu1 %v1349_v60, %s2138_s12  ;;  %1679 = vrot.lane.b32.xlu0 %v1347_v63, %s2138_s12 }
 0x258   : > { %1685 = vrot.lane.b32.xlu1 %v1353_v57, %s2138_s12  ;;  %1683 = vrot.lane.b32.xlu0 %v1351_v30, %s2138_s12 }
 0x25c   : > { %v1408_v27 = vpop.permute.xlu1 %1407 }
 0x25d   : > { %v1404_v20 = vpop.permute.xlu0 %1403  ;;  %1430 = vst.msk [vmem:[%s2204_s29 + $0x20] sm:$0xff] %vm1427_vm13, %v1408_v27 }
 0x25e   : > { %1428 = vst.msk [vmem:[%s2204_s29] sm:$0xff] %vm1427_vm13, %v1404_v20 }
 0x260   : > { %v1410_v2 = vpop.permute.xlu1 %1409 }
 0x261   : > { %v1406_v51 = vpop.permute.xlu0 %1405  ;;  %1431 = vst.msk [vmem:[%s2204_s29 + $0x30] sm:$0xff] %vm1427_vm13, %v1410_v2 }
 0x262   : > { %1429 = vst.msk [vmem:[%s2204_s29 + $0x10] sm:$0xff] %vm1427_vm13, %v1406_v51 }
 0x264   : > { %v1414_v38 = vpop.permute.xlu1 %1413 }
 0x265   : > { %v1412_v9 = vpop.permute.xlu0 %1411  ;;  %1433 = vst.msk [vmem:[%s2204_s29 + $0x50] sm:$0xff] %vm1427_vm13, %v1414_v38 }
 0x266   : > { %1432 = vst.msk [vmem:[%s2204_s29 + $0x40] sm:$0xff] %vm1427_vm13, %v1412_v9 }
 0x268   : > { %v1418_v46 = vpop.permute.xlu1 %1417 }
 0x269   : > { %v1416_v32 = vpop.permute.xlu0 %1415  ;;  %1435 = vst.msk [vmem:[%s2204_s29 + $0x70] sm:$0xff] %vm1427_vm13, %v1418_v46 }
 0x26a   : > { %1434 = vst.msk [vmem:[%s2204_s29 + $0x60] sm:$0xff] %vm1427_vm13, %v1416_v32 }
 0x27e   : > { %v1471_v54 = vpop.permute.xlu1 %1470  ;;  %v1469_v52 = vpop.permute.xlu0 %1468 }
 0x27f   : > { %1494 = vst.msk [vmem:[%s2204_s29 + $0x10] sm:$0xff] %vm1492_vm14, %v1471_v54  ;;  %1493 = vst.msk [vmem:[%s2204_s29] sm:$0xff] %vm1492_vm14, %v1469_v52 }
 0x282   : > { %v1475_v18 = vpop.permute.xlu1 %1474  ;;  %v1473_v19 = vpop.permute.xlu0 %1472 }
 0x283   : > { %1496 = vst.msk [vmem:[%s2204_s29 + $0x30] sm:$0xff] %vm1492_vm14, %v1475_v18  ;;  %1495 = vst.msk [vmem:[%s2204_s29 + $0x20] sm:$0xff] %vm1492_vm14, %v1473_v19 }
 0x286   : > { %v1479_v25 = vpop.permute.xlu1 %1478  ;;  %v1477_v34 = vpop.permute.xlu0 %1476 }
 0x287   : > { %1498 = vst.msk [vmem:[%s2204_s29 + $0x50] sm:$0xff] %vm1492_vm14, %v1479_v25  ;;  %1497 = vst.msk [vmem:[%s2204_s29 + $0x40] sm:$0xff] %vm1492_vm14, %v1477_v34 }
 0x28a   : > { %v1483_v59 = vpop.permute.xlu1 %1482  ;;  %v1481_v61 = vpop.permute.xlu0 %1480 }
 0x28b   : > { %1500 = vst.msk [vmem:[%s2204_s29 + $0x70] sm:$0xff] %vm1492_vm14, %v1483_v59  ;;  %1499 = vst.msk [vmem:[%s2204_s29 + $0x60] sm:$0xff] %vm1492_vm14, %v1481_v61 }
 0x28e   : > { %v1504_v26 = vpop.permute.xlu1 %1503  ;;  %v1502_v23 = vpop.permute.xlu0 %1501 }
 0x28f   : > { %1527 = vst.msk [vmem:[%s2204_s29 + $0x10] sm:$0xff] %vm1525_vm15, %v1504_v26  ;;  %1526 = vst.msk [vmem:[%s2204_s29] sm:$0xff] %vm1525_vm15, %v1502_v23 }
 0x292   : > { %v1578_v47 = vpop.permute.xlu1 %1577  ;;  %v1576_v55 = vpop.permute.xlu0 %1575 }
 0x293   : > { %1922 = vst.msk [vmem:[%s2204_s29 + $0x18] sm:$0xff] %vm1427_vm13, %v1578_v47  ;;  %1921 = vst.msk [vmem:[%s2204_s29 + $0x8] sm:$0xff] %vm1427_vm13, %v1576_v55 }
 0x296   : > { %v1582_v35 = vpop.permute.xlu1 %1581  ;;  %v1580_v42 = vpop.permute.xlu0 %1579 }
 0x297   : > { %1924 = vst.msk [vmem:[%s2204_s29 + $0x38] sm:$0xff] %vm1427_vm13, %v1582_v35  ;;  %1923 = vst.msk [vmem:[%s2204_s29 + $0x28] sm:$0xff] %vm1427_vm13, %v1580_v42 }
 0x29a   : > { %v1586_v16 = vpop.permute.xlu1 %1585  ;;  %v1584_v3 = vpop.permute.xlu0 %1583 }
 0x29b   : > { %1926 = vst.msk [vmem:[%s2204_s29 + $0x58] sm:$0xff] %vm1427_vm13, %v1586_v16  ;;  %1925 = vst.msk [vmem:[%s2204_s29 + $0x48] sm:$0xff] %vm1427_vm13, %v1584_v3 }
 0x29e   : > { %v1590_v44 = vpop.permute.xlu1 %1589  ;;  %v1588_v10 = vpop.permute.xlu0 %1587 }
 0x29f   : > { %1928 = vst.msk [vmem:[%s2204_s29 + $0x78] sm:$0xff] %vm1427_vm13, %v1590_v44  ;;  %1927 = vst.msk [vmem:[%s2204_s29 + $0x68] sm:$0xff] %vm1427_vm13, %v1588_v10 }
 0x2a2   : > { %v1642_v24 = vpop.permute.xlu1 %1641  ;;  %v1640_v22 = vpop.permute.xlu0 %1639 }
 0x2a3   : > { %1930 = vst.msk [vmem:[%s2204_s29 + $0x18] sm:$0xff] %vm1492_vm14, %v1642_v24  ;;  %1929 = vst.msk [vmem:[%s2204_s29 + $0x8] sm:$0xff] %vm1492_vm14, %v1640_v22 }
 0x2a6   : > { %v1646_v5 = vpop.permute.xlu1 %1645  ;;  %v1644_v36 = vpop.permute.xlu0 %1643 }
 0x2a7   : > { %1932 = vst.msk [vmem:[%s2204_s29 + $0x38] sm:$0xff] %vm1492_vm14, %v1646_v5  ;;  %1931 = vst.msk [vmem:[%s2204_s29 + $0x28] sm:$0xff] %vm1492_vm14, %v1644_v36 }
 0x2aa   : > { %v1650_v62 = vpop.permute.xlu1 %1649  ;;  %v1648_v31 = vpop.permute.xlu0 %1647 }
 0x2ab   : > { %1934 = vst.msk [vmem:[%s2204_s29 + $0x58] sm:$0xff] %vm1492_vm14, %v1650_v62  ;;  %1933 = vst.msk [vmem:[%s2204_s29 + $0x48] sm:$0xff] %vm1492_vm14, %v1648_v31 }
 0x2ae   : > { %v1654_v7 = vpop.permute.xlu1 %1653  ;;  %v1652_v28 = vpop.permute.xlu0 %1651 }
 0x2af   : > { %1936 = vst.msk [vmem:[%s2204_s29 + $0x78] sm:$0xff] %vm1492_vm14, %v1654_v7  ;;  %1935 = vst.msk [vmem:[%s2204_s29 + $0x68] sm:$0xff] %vm1492_vm14, %v1652_v28 }
 0x2b2   : > { %v1508_v49 = vpop.permute.xlu1 %1507  ;;  %v1506_v60 = vpop.permute.xlu0 %1505 }
 0x2b3   : > { %1529 = vst.msk [vmem:[%s2204_s29 + $0x30] sm:$0xff] %vm1525_vm15, %v1508_v49  ;;  %1528 = vst.msk [vmem:[%s2204_s29 + $0x20] sm:$0xff] %vm1525_vm15, %v1506_v60 }
 0x2b6   : > { %v1512_v63 = vpop.permute.xlu1 %1511  ;;  %v1510_v1 = vpop.permute.xlu0 %1509 }
 0x2b7   : > { %1531 = vst.msk [vmem:[%s2204_s29 + $0x50] sm:$0xff] %vm1525_vm15, %v1512_v63  ;;  %1530 = vst.msk [vmem:[%s2204_s29 + $0x40] sm:$0xff] %vm1525_vm15, %v1510_v1 }
 0x2ba   : > { %v1516_v11 = vpop.permute.xlu1 %1515  ;;  %v1514_v14 = vpop.permute.xlu0 %1513 }
 0x2bb   : > { %1533 = vst.msk [vmem:[%s2204_s29 + $0x70] sm:$0xff] %vm1525_vm15, %v1516_v11  ;;  %1532 = vst.msk [vmem:[%s2204_s29 + $0x60] sm:$0xff] %vm1525_vm15, %v1514_v14 }
 0x2be   : > { %v1674_v8 = vpop.permute.xlu1 %1673  ;;  %v1672_v57 = vpop.permute.xlu0 %1671 }
 0x2bf   : > { %1938 = vst.msk [vmem:[%s2204_s29 + $0x18] sm:$0xff] %vm1525_vm15, %v1674_v8  ;;  %1937 = vst.msk [vmem:[%s2204_s29 + $0x8] sm:$0xff] %vm1525_vm15, %v1672_v57 }
 0x2c2   : > { %v1678_v30 = vpop.permute.xlu1 %1677  ;;  %v1676_v56 = vpop.permute.xlu0 %1675 }
 0x2c3   : > { %1940 = vst.msk [vmem:[%s2204_s29 + $0x38] sm:$0xff] %vm1525_vm15, %v1678_v30  ;;  %1939 = vst.msk [vmem:[%s2204_s29 + $0x28] sm:$0xff] %vm1525_vm15, %v1676_v56 }
 0x2c6   : > { %v1682_v41 = vpop.permute.xlu1 %1681  ;;  %v1680_v15 = vpop.permute.xlu0 %1679 }
 0x2c7   : > { %1942 = vst.msk [vmem:[%s2204_s29 + $0x58] sm:$0xff] %vm1525_vm15, %v1682_v41  ;;  %1941 = vst.msk [vmem:[%s2204_s29 + $0x48] sm:$0xff] %vm1525_vm15, %v1680_v15 }
 0x2ca   : > { %v1686_v0 = vpop.permute.xlu1 %1685  ;;  %v1684_v12 = vpop.permute.xlu0 %1683 }
 0x2cb   : > { %1944 = vst.msk [vmem:[%s2204_s29 + $0x78] sm:$0xff] %vm1525_vm15, %v1686_v0  ;;  %1943 = vst.msk [vmem:[%s2204_s29 + $0x68] sm:$0xff] %vm1525_vm15, %v1684_v12 }
 0x2cc PF: > { %s13_s16 = sadd.s32 1, %s2131_s16   ;;  %s3149_s12 = smov %s2123_s14 }
 0x2cd   : > { %p10_p8 = scmp.ge.s32.totalorder %s13_s16, 6   ;;  %s3150_s13 = smov %s2127_s15 }
 0x2ce   : > { %s3151_s14 = smov %s3154_s17  ;;  %s3152_s15 = smov %s3158_s18 }
 0x2cf   :  { %12 = sbr.rel (!%p10_p8) target bundleno = 3 (0x3), region = 84 }

</bundles_post_ra>
